<compile_context>
chip_gen: v7x
topology: tpu7x:2x2x1
jax: 0.10.0
libtpu: 0.0.40
codegen_flags: <defaults>
</compile_context>

<pallas_src>
from functools import partial

import jax
import jax.numpy as jnp
from jax.experimental import pallas as pl
from jax.experimental.pallas import tpu as pltpu


# ----------------------------------------------------------------------------
# In-kernel building blocks (everything is 2-D, lane-dense (rows, W*C))
# ----------------------------------------------------------------------------

def _conv3x3_gn_silu(x2, w_ref, b_row, g_row, be_row, rg, bg, ssel, sselt,
                     nb, hh):
    """Conv3x3(pad=1) + GroupNorm + SiLU on a (Nb*H, W*C) f32 slab."""
    M, WC = x2.shape
    dt = w_ref.dtype

    # ---- 3x3 conv as ONE K=3*WC MXU matmul (single cast to MXU dtype) --------
    xb = x2.astype(dt)
    zrow = jnp.zeros((1, WC), dt)
    xpad = jnp.concatenate([zrow, xb, zrow], axis=0)          # (M+2, WC)
    x_up = xpad[0:M]                                          # row r -> x[r-1]
    x_dn = xpad[2:M + 2]                                      # row r -> x[r+1]
    if nb > 1:  # zero cross-sample bleed at internal per-sample height borders
        r = jax.lax.broadcasted_iota(jnp.int32, (M, 1), 0) % hh
        x_up = jnp.where(r == 0, zrow, x_up)
        x_dn = jnp.where(r == hh - 1, zrow, x_dn)
    xcat = jnp.concatenate([x_up, xb, x_dn], axis=1)          # (M, 3*WC)
    acc = jnp.dot(xcat, w_ref[...],
                  preferred_element_type=jnp.float32) + b_row  # (M, WC) f32

    # ---- GroupNorm (per-sample f32 stats, two-pass, all 2-D) ------------------
    # ssel (Nb,M): per-sample row reduce; rg (WC,G)/bg (G,WC): two-stage group
    # reduce + broadcast (bg carries 1/(H*W*Cg)); sselt (M,Nb): row broadcast.
    def stat_rows(v):
        t = jnp.dot(ssel, v, preferred_element_type=jnp.float32)   # (Nb, WC)
        t = jnp.dot(t, rg, preferred_element_type=jnp.float32)     # (Nb, G)
        return jnp.dot(t, bg, preferred_element_type=jnp.float32)  # (Nb, WC)

    mean_f = jnp.dot(sselt, stat_rows(acc),
                     preferred_element_type=jnp.float32)            # (M, WC)
    cent = acc - mean_f
    var_r = stat_rows(cent * cent)                                  # (Nb, WC)
    # gamma folded into the per-sample rstd row (saves a full-slab multiply)
    srow_f = jnp.dot(sselt, g_row * jax.lax.rsqrt(var_r + 1e-5),
                     preferred_element_type=jnp.float32)            # (M, WC)
    xn = cent * srow_f + be_row
    return xn * jax.nn.sigmoid(xn)                                  # SiLU


def _upblock_kernel(x_ref, emb_ref, wd_ref, bd_ref,
                    w0_ref, b0_ref, g0_ref, be0_ref,
                    w1_ref, b1_ref, g1_ref, be1_ref,
                    rg_ref, bg_ref, ssel_ref, sselt_ref, ew_ref, eb_ref,
                    o_ref, *, apply_emb, nb, hh):
    """One grid step == one block of `nb` batch samples, fully VMEM-resident."""
    # ConvTranspose2d(k=2, s=2): the wrapper pre-interleaves the input rows as
    # [x[h], 0] / [0, x[h]] so a single matmul against the parity-stacked
    # weight emits the upsampled rows already in (2*h + parity) order.
    y = jnp.dot(x_ref[...].astype(wd_ref.dtype), wd_ref[...],
                preferred_element_type=jnp.float32)
    shortcut = y + bd_ref[...]                                      # (M, WC) f32

    rg, bg = rg_ref[...], bg_ref[...]
    ssel, sselt = ssel_ref[...], sselt_ref[...]
    out = _conv3x3_gn_silu(shortcut, w0_ref, b0_ref[...], g0_ref[...],
                           be0_ref[...], rg, bg, ssel, sselt, nb, hh)
    out = _conv3x3_gn_silu(out, w1_ref, b1_ref[...], g1_ref[...],
                           be1_ref[...], rg, bg, ssel, sselt, nb, hh)

    if apply_emb:
        i = pl.program_id(0)
        e = emb_ref[pl.ds(i * nb, nb), :]                           # (Nb, E)
        s = jnp.dot(e, ew_ref[...],
                    preferred_element_type=jnp.float32) + eb_ref[...]  # (Nb, WC)
        scale = jnp.dot(sselt, s * jax.nn.sigmoid(s) + 1.0,
                        preferred_element_type=jnp.float32)         # (M, WC)
        out = out * scale

    o_ref[...] = (out + shortcut).astype(o_ref.dtype)


# ----------------------------------------------------------------------------
# Wrapper-side layout plumbing (tiny, parameter-only rearrangements)
# ----------------------------------------------------------------------------

def _deconv_matrix(wt, W_out, C):
    """(Cin, Cout, 2, 2) ConvTranspose2d weight -> (2*Win*Cin, W_out*C).

    Row block di holds the weights producing output rows 2*h+di; the wrapper
    feeds row 2*h+di of the input as [x[h], 0] (di=0) / [0, x[h]] (di=1), so a
    single matmul emits deconv rows in final order.  Columns: (w_out=2j'+dj, co)."""
    Cin = wt.shape[0]
    Win = W_out // 2
    eye = jnp.eye(Win, dtype=wt.dtype)
    t = jnp.einsum("ab,code->dacbeo", eye, wt)   # (di, j, ci, j', dj, co)
    return t.reshape(2 * Win * Cin, W_out * C)


def _toeplitz_conv_matrix(w_hwio, W, C):
    """(3,3,C,C) HWIO weight -> (3*W*C, W*C) stacked block-Toeplitz matrix.

    Row block kh acts on x[h+kh-1]; within a block, entry
    [w_in*C+ci, w_out*C+co] = w[kh, w_in-w_out+1, ci, co] (zero outside 0..2,
    which also folds in the width zero-padding)."""
    a = jnp.arange(W)
    kw = a[:, None] - a[None, :] + 1
    sel = (kw[None] == jnp.arange(3)[:, None, None]).astype(w_hwio.dtype)
    wk = jnp.einsum("kab,hkio->haibo", sel, w_hwio)            # (3, W, C, W, C)
    return wk.reshape(3 * W * C, W * C)


def _row_tile(v, W):
    """(C,) channel vector -> (1, W*C) lane-dense row (v[c] at lane w*C+c)."""
    return jnp.tile(v.astype(jnp.float32), W).reshape(1, -1)


def up_block_forward(params, x_nchw, emb=None, mxu_dtype=jnp.bfloat16,
                     batch_block=None):
    """Pallas implementation of UpBlock.forward.  x_nchw: (N, Cin, Hin, Win)."""
    N, Cin, Hin, Win = x_nchw.shape
    wt = params["deconv_w"]                        # (Cin, Cout, 2, 2)
    C = wt.shape[1]
    H, W = 2 * Hin, 2 * Win
    WC = W * C
    G = params["num_groups"]
    K2 = 2 * Win * Cin

    # Fold as many samples per grid step as keep M = Nb*H <= 256 rows.
    if batch_block is None:
        batch_block = 1
        for cand in range(1, N + 1):
            if N % cand == 0 and cand * H <= 256:
                batch_block = cand
    Nb = batch_block
    assert N % Nb == 0
    M = Nb * H

    io_dtype = mxu_dtype   # activations cross HBM in the MXU dtype

    # Activation layout plumbing: NCHW -> (N, Hin, Win*Cin) lane-dense, then
    # duplicate each row as [x, 0] / [0, x] (even/odd output-row parity).
    x2d = jnp.transpose(x_nchw, (0, 2, 3, 1)).reshape(N, Hin, Win * Cin)
    x2d = x2d.astype(io_dtype)
    z = jnp.zeros_like(x2d)
    x_rows = jnp.stack([jnp.concatenate([x2d, z], axis=-1),
                        jnp.concatenate([z, x2d], axis=-1)],
                       axis=2).reshape(N * H, K2)

    # Parameter repacking (one-time).
    wd = _deconv_matrix(wt, W, C).astype(mxu_dtype)
    bd = _row_tile(params["deconv_b"], W)
    w0 = _toeplitz_conv_matrix(params["conv0_w"], W, C).astype(mxu_dtype)
    w1 = _toeplitz_conv_matrix(params["conv1_w"], W, C).astype(mxu_dtype)
    b0, g0, be0 = (_row_tile(params[k], W) for k in ("conv0_b", "gn0_g", "gn0_b"))
    b1, g1, be1 = (_row_tile(params[k], W) for k in ("conv1_b", "gn1_g", "gn1_b"))

    # Two-stage GroupNorm matrices + per-sample row selectors.
    Cg = C // G
    grp = (jnp.arange(WC) % C) // Cg
    rg = (grp[:, None] == jnp.arange(G)[None, :]).astype(jnp.float32)      # (WC, G)
    bg = (jnp.arange(G)[:, None] == grp[None, :]).astype(jnp.float32) \
        / float(H * W * Cg)                                                # (G, WC)
    ssel = jnp.kron(jnp.eye(Nb, dtype=jnp.float32),
                    jnp.ones((1, H), jnp.float32))                         # (Nb, M)
    sselt = ssel.T                                                         # (M, Nb)

    has_emb = emb is not None
    if has_emb and "emb_w" not in params:
        raise ValueError("emb was passed but params have no 'emb_w' (to_emb is None)")
    if has_emb:
        ew = jnp.tile(params["emb_w"].astype(jnp.float32), (1, W))         # (E, WC)
        eb = _row_tile(params["emb_b"], W)
        emb2 = emb.astype(jnp.float32).reshape(N, -1)
    else:
        ew = jnp.zeros((8, WC), jnp.float32)
        eb = jnp.zeros((1, WC), jnp.float32)
        emb2 = jnp.zeros((N, 8), jnp.float32)

    def full(a):
        return pl.BlockSpec(a.shape, lambda n: (0, 0))

    out = pl.pallas_call(
        partial(_upblock_kernel, apply_emb=has_emb, nb=Nb, hh=H),
        out_shape=jax.ShapeDtypeStruct((N * H, WC), io_dtype),
        grid=(N // Nb,),
        in_specs=[
            pl.BlockSpec((M, K2), lambda n: (n, 0)),       # x, row-blocked
            full(emb2),                                    # emb (whole, tiny)
            full(wd), full(bd),
            full(w0), full(b0), full(g0), full(be0),
            full(w1), full(b1), full(g1), full(be1),
            full(rg), full(bg), full(ssel), full(sselt),
            full(ew), full(eb),
        ],
        out_specs=pl.BlockSpec((M, WC), lambda n: (n, 0)),  # lane-dense output
        compiler_params=pltpu.CompilerParams(
            dimension_semantics=("parallel",)),
    )(x_rows, emb2, wd, bd, w0, b0, g0, be0, w1, b1, g1, be1,
      rg, bg, ssel, sselt, ew, eb)

    return jnp.transpose(out.reshape(N, H, W, C), (0, 3, 1, 2))   # NCHW, io_dtype


# ----------------------------------------------------------------------------
# Pure-JAX reference (PyTorch semantics) for the correctness check
# ----------------------------------------------------------------------------

def reference(params, x_nchw, emb):
    x = jnp.transpose(x_nchw, (0, 2, 3, 1))
    N, H, W, _ = x.shape
    wt = params["deconv_w"]
    y = jnp.einsum("nhwc,cokl->nhwklo", x, wt) + params["deconv_b"]
    y = y.transpose(0, 1, 3, 2, 4, 5).reshape(N, 2 * H, 2 * W, -1)
    shortcut = y

    def block(z, w, b, g, be, G):
        z = jax.lax.conv_general_dilated(
            z, w, window_strides=(1, 1), padding="SAME",
            dimension_numbers=("NHWC", "HWIO", "NHWC")) + b
        n, h, ww, c = z.shape
        zr = z.reshape(n, h, ww, G, c // G)
        mean = zr.mean(axis=(1, 2, 4), keepdims=True)
        var = ((zr - mean) ** 2).mean(axis=(1, 2, 4), keepdims=True)
        zn = (zr - mean) * jax.lax.rsqrt(var + 1e-5)
        zn = zn.reshape(n, h, ww, c) * g + be
        return zn * jax.nn.sigmoid(zn)

    G = params["num_groups"]
    y1 = block(y, params["conv0_w"], params["conv0_b"], params["gn0_g"], params["gn0_b"], G)
    y2 = block(y1, params["conv1_w"], params["conv1_b"], params["gn1_g"], params["gn1_b"], G)
    s = emb @ params["emb_w"] + params["emb_b"]
    s = s * jax.nn.sigmoid(s) + 1.0
    out = y2 * s[:, None, None, :] + shortcut
    return jnp.transpose(out, (0, 3, 1, 2))


# ----------------------------------------------------------------------------
# Main
# ----------------------------------------------------------------------------

if __name__ == "__main__":
    in_chans, out_chans, num_groups, emb_dim = 4, 8, 4, 32
    N, Hin, Win = 2, 8, 8          # output spatial = 16x16, W*C = 128 lanes

    key = jax.random.PRNGKey(0)
    ks = jax.random.split(key, 14)
    params = {
        "num_groups": num_groups,
        # ConvTranspose2d weight (PyTorch layout: Cin, Cout, kH, kW)
        "deconv_w": 0.1 * jax.random.normal(ks[0], (in_chans, out_chans, 2, 2), jnp.float32),
        "deconv_b": 0.05 * jax.random.normal(ks[1], (out_chans,), jnp.float32),
        # Conv2d weights stored directly in HWIO
        "conv0_w": 0.1 * jax.random.normal(ks[2], (3, 3, out_chans, out_chans), jnp.float32),
        "conv0_b": 0.05 * jax.random.normal(ks[3], (out_chans,), jnp.float32),
        "gn0_g": 1.0 + 0.1 * jax.random.normal(ks[4], (out_chans,), jnp.float32),
        "gn0_b": 0.05 * jax.random.normal(ks[5], (out_chans,), jnp.float32),
        "conv1_w": 0.1 * jax.random.normal(ks[6], (3, 3, out_chans, out_chans), jnp.float32),
        "conv1_b": 0.05 * jax.random.normal(ks[7], (out_chans,), jnp.float32),
        "gn1_g": 1.0 + 0.1 * jax.random.normal(ks[8], (out_chans,), jnp.float32),
        "gn1_b": 0.05 * jax.random.normal(ks[9], (out_chans,), jnp.float32),
        # to_emb Linear (emb_dim -> out_chans), stored as (in, out)
        "emb_w": 0.1 * jax.random.normal(ks[10], (emb_dim, out_chans), jnp.float32),
        "emb_b": 0.05 * jax.random.normal(ks[11], (out_chans,), jnp.float32),
    }

    x = jax.random.normal(ks[12], (N, in_chans, Hin, Win), jnp.float32)   # NCHW
    emb = jax.random.normal(ks[13], (N, emb_dim), jnp.float32)

    ref = jax.block_until_ready(reference(params, x, emb))

    # Strict check: f32 MXU operands / f32 I/O must track the f32 reference.
    out_f32 = jax.block_until_ready(
        up_block_forward(params, x, emb, mxu_dtype=jnp.float32))
    assert out_f32.shape == (N, out_chans, 2 * Hin, 2 * Win), out_f32.shape
    err32 = float(jnp.max(jnp.abs(out_f32.astype(jnp.float32) - ref)))
    assert err32 < 5e-3, f"f32-path max abs err {err32}"

    # Performance path: bf16 MXU operands + bf16 activations in/out (f32 stats).
    out_bf16 = jax.block_until_ready(up_block_forward(params, x, emb))
    err16 = float(jnp.max(jnp.abs(out_bf16.astype(jnp.float32) - ref)))
    scale = float(jnp.max(jnp.abs(ref)))
    assert err16 <= 5e-2 * max(1.0, scale), f"bf16-path err {err16} (ref max {scale})"

    print("KERNEL_OK")
</pallas_src>

<mosaic_0001>
module attributes {stable_mosaic.version = 11 : i64} {
  func.func @_upblock_kernel(%arg0: i32, %arg1: memref<32x64xf32, #tpu.memory_space<vmem>>, %arg2: memref<2x32xf32, #tpu.memory_space<vmem>>, %arg3: memref<64x128xf32, #tpu.memory_space<vmem>>, %arg4: memref<1x128xf32, #tpu.memory_space<vmem>>, %arg5: memref<384x128xf32, #tpu.memory_space<vmem>>, %arg6: memref<1x128xf32, #tpu.memory_space<vmem>>, %arg7: memref<1x128xf32, #tpu.memory_space<vmem>>, %arg8: memref<1x128xf32, #tpu.memory_space<vmem>>, %arg9: memref<384x128xf32, #tpu.memory_space<vmem>>, %arg10: memref<1x128xf32, #tpu.memory_space<vmem>>, %arg11: memref<1x128xf32, #tpu.memory_space<vmem>>, %arg12: memref<1x128xf32, #tpu.memory_space<vmem>>, %arg13: memref<128x4xf32, #tpu.memory_space<vmem>>, %arg14: memref<4x128xf32, #tpu.memory_space<vmem>>, %arg15: memref<2x32xf32, #tpu.memory_space<vmem>>, %arg16: memref<32x2xf32, #tpu.memory_space<vmem>>, %arg17: memref<32x128xf32, #tpu.memory_space<vmem>>, %arg18: memref<1x128xf32, #tpu.memory_space<vmem>>, %arg19: memref<32x128xf32, #tpu.memory_space<vmem>>) attributes {dimension_semantics = [#tpu.dimension_semantics<parallel>], iteration_bounds = array<i64: 1>, scalar_prefetch = 0 : i64, scratch_operands = 0 : i64, tpu.core_type = #tpu.core_type<tc>, window_params = [{transform_indices = @transform_0, window_bounds = array<i64: 32, 64>}, {pipeline_mode = #tpu.pipeline_mode<synchronous>, transform_indices = @transform_1, window_bounds = array<i64: 2, 32>}, {pipeline_mode = #tpu.pipeline_mode<synchronous>, transform_indices = @transform_2, window_bounds = array<i64: 64, 128>}, {pipeline_mode = #tpu.pipeline_mode<synchronous>, transform_indices = @transform_3, window_bounds = array<i64: 1, 128>}, {pipeline_mode = #tpu.pipeline_mode<synchronous>, transform_indices = @transform_4, window_bounds = array<i64: 384, 128>}, {pipeline_mode = #tpu.pipeline_mode<synchronous>, transform_indices = @transform_5, window_bounds = array<i64: 1, 128>}, {pipeline_mode = #tpu.pipeline_mode<synchronous>, transform_indices = @transform_6, window_bounds = array<i64: 1, 128>}, {pipeline_mode = #tpu.pipeline_mode<synchronous>, transform_indices = @transform_7, window_bounds = array<i64: 1, 128>}, {pipeline_mode = #tpu.pipeline_mode<synchronous>, transform_indices = @transform_8, window_bounds = array<i64: 384, 128>}, {pipeline_mode = #tpu.pipeline_mode<synchronous>, transform_indices = @transform_9, window_bounds = array<i64: 1, 128>}, {pipeline_mode = #tpu.pipeline_mode<synchronous>, transform_indices = @transform_10, window_bounds = array<i64: 1, 128>}, {pipeline_mode = #tpu.pipeline_mode<synchronous>, transform_indices = @transform_11, window_bounds = array<i64: 1, 128>}, {pipeline_mode = #tpu.pipeline_mode<synchronous>, transform_indices = @transform_12, window_bounds = array<i64: 128, 4>}, {pipeline_mode = #tpu.pipeline_mode<synchronous>, transform_indices = @transform_13, window_bounds = array<i64: 4, 128>}, {pipeline_mode = #tpu.pipeline_mode<synchronous>, transform_indices = @transform_14, window_bounds = array<i64: 2, 32>}, {pipeline_mode = #tpu.pipeline_mode<synchronous>, transform_indices = @transform_15, window_bounds = array<i64: 32, 2>}, {pipeline_mode = #tpu.pipeline_mode<synchronous>, transform_indices = @transform_16, window_bounds = array<i64: 32, 128>}, {pipeline_mode = #tpu.pipeline_mode<synchronous>, transform_indices = @transform_17, window_bounds = array<i64: 1, 128>}, {transform_indices = @transform_18, window_bounds = array<i64: 32, 128>}]} {
    %c0 = arith.constant 0 : index
    %c0_0 = arith.constant 0 : index
    %0 = vector.load %arg1[%c0, %c0_0] : memref<32x64xf32, #tpu.memory_space<vmem>>, vector<32x64xf32>
    %c0_1 = arith.constant 0 : index
    %c0_2 = arith.constant 0 : index
    %1 = vector.load %arg3[%c0_1, %c0_2] : memref<64x128xf32, #tpu.memory_space<vmem>>, vector<64x128xf32>
    %cst = arith.constant dense<0.000000e+00> : vector<32x128xf32>
    %2 = tpu.matmul %0, %1, %cst {dimension_numbers = #tpu.dot_dimension_numbers<[1], [0], [0], [1], [0, 0, 1, 1], [], []>} : vector<32x64xf32>, vector<64x128xf32>, vector<32x128xf32> -> vector<32x128xf32>
    %c0_3 = arith.constant 0 : index
    %c0_4 = arith.constant 0 : index
    %3 = vector.load %arg4[%c0_3, %c0_4] : memref<1x128xf32, #tpu.memory_space<vmem>>, vector<1x128xf32>
    %4 = vector.broadcast %3 : vector<1x128xf32> to vector<32x128xf32>
    %5 = arith.addf %2, %4 : vector<32x128xf32>
    %c0_5 = arith.constant 0 : index
    %c0_6 = arith.constant 0 : index
    %6 = vector.load %arg13[%c0_5, %c0_6] : memref<128x4xf32, #tpu.memory_space<vmem>>, vector<128x4xf32>
    %c0_7 = arith.constant 0 : index
    %c0_8 = arith.constant 0 : index
    %7 = vector.load %arg14[%c0_7, %c0_8] : memref<4x128xf32, #tpu.memory_space<vmem>>, vector<4x128xf32>
    %c0_9 = arith.constant 0 : index
    %c0_10 = arith.constant 0 : index
    %8 = vector.load %arg15[%c0_9, %c0_10] : memref<2x32xf32, #tpu.memory_space<vmem>>, vector<2x32xf32>
    %c0_11 = arith.constant 0 : index
    %c0_12 = arith.constant 0 : index
    %9 = vector.load %arg16[%c0_11, %c0_12] : memref<32x2xf32, #tpu.memory_space<vmem>>, vector<32x2xf32>
    %c0_13 = arith.constant 0 : index
    %c0_14 = arith.constant 0 : index
    %10 = vector.load %arg6[%c0_13, %c0_14] : memref<1x128xf32, #tpu.memory_space<vmem>>, vector<1x128xf32>
    %c0_15 = arith.constant 0 : index
    %c0_16 = arith.constant 0 : index
    %11 = vector.load %arg7[%c0_15, %c0_16] : memref<1x128xf32, #tpu.memory_space<vmem>>, vector<1x128xf32>
    %c0_17 = arith.constant 0 : index
    %c0_18 = arith.constant 0 : index
    %12 = vector.load %arg8[%c0_17, %c0_18] : memref<1x128xf32, #tpu.memory_space<vmem>>, vector<1x128xf32>
    %cst_19 = arith.constant 0.000000e+00 : f32
    %13 = vector.broadcast %cst_19 : f32 to vector<1x128xf32>
    %14 = tpu.concatenate %13, %5, %13 in 0 : vector<1x128xf32>, vector<32x128xf32>, vector<1x128xf32> -> vector<34x128xf32>
    %15 = vector.extract_strided_slice %14 {offsets = [0, 0], sizes = [32, 128], strides = [1, 1]} : vector<34x128xf32> to vector<32x128xf32>
    %16 = vector.extract_strided_slice %14 {offsets = [2, 0], sizes = [32, 128], strides = [1, 1]} : vector<34x128xf32> to vector<32x128xf32>
    %17 = tpu.iota {dimensions = array<i32: 0>} : vector<32x1xi32>
    %c16_i32 = arith.constant 16 : i32
    %c0_i32 = arith.constant 0 : i32
    %18 = arith.cmpi eq, %c16_i32, %c0_i32 : i32
    %c1_i32 = arith.constant 1 : i32
    %19 = arith.select %18, %c1_i32, %c16_i32 : i32
    %20 = vector.broadcast %19 : i32 to vector<32x1xi32>
    %21 = arith.remsi %17, %20 : vector<32x1xi32>
    %c0_i32_20 = arith.constant 0 : i32
    %22 = vector.broadcast %c0_i32_20 : i32 to vector<32x1xi32>
    %23 = arith.cmpi ne, %21, %22 : vector<32x1xi32>
    %c0_i32_21 = arith.constant 0 : i32
    %24 = vector.broadcast %c0_i32_21 : i32 to vector<32x1xi32>
    %25 = arith.cmpi slt, %21, %24 : vector<32x1xi32>
    %c0_i32_22 = arith.constant 0 : i32
    %26 = arith.cmpi slt, %19, %c0_i32_22 : i32
    %27 = vector.broadcast %26 : i1 to vector<32x1xi1>
    %28 = vector.broadcast %27 : vector<32x1xi1> to vector<32x1xi1>
    %29 = arith.xori %25, %28 : vector<32x1xi1>
    %30 = arith.andi %29, %23 : vector<32x1xi1>
    %31 = vector.broadcast %19 : i32 to vector<32x1xi32>
    %32 = arith.addi %21, %31 : vector<32x1xi32>
    %33 = arith.select %30, %32, %21 : vector<32x1xi1>, vector<32x1xi32>
    %c0_i32_23 = arith.constant 0 : i32
    %34 = vector.broadcast %c0_i32_23 : i32 to vector<32x1xi32>
    %35 = arith.cmpi eq, %33, %34 : vector<32x1xi32>
    %36 = vector.shape_cast %35 : vector<32x1xi1> to vector<32x1xi1>
    %37 = vector.broadcast %36 : vector<32x1xi1> to vector<32x128xi1>
    %38 = vector.shape_cast %13 : vector<1x128xf32> to vector<1x128xf32>
    %39 = vector.broadcast %38 : vector<1x128xf32> to vector<32x128xf32>
    %40 = arith.select %37, %39, %15 : vector<32x128xi1>, vector<32x128xf32>
    %c15_i32 = arith.constant 15 : i32
    %41 = vector.broadcast %c15_i32 : i32 to vector<32x1xi32>
    %42 = arith.cmpi eq, %33, %41 : vector<32x1xi32>
    %43 = vector.shape_cast %42 : vector<32x1xi1> to vector<32x1xi1>
    %44 = vector.broadcast %43 : vector<32x1xi1> to vector<32x128xi1>
    %45 = vector.shape_cast %13 : vector<1x128xf32> to vector<1x128xf32>
    %46 = vector.broadcast %45 : vector<1x128xf32> to vector<32x128xf32>
    %47 = arith.select %44, %46, %16 : vector<32x128xi1>, vector<32x128xf32>
    %48 = tpu.concatenate %40, %5, %47 in 1 : vector<32x128xf32>, vector<32x128xf32>, vector<32x128xf32> -> vector<32x384xf32>
    %c0_24 = arith.constant 0 : index
    %c0_25 = arith.constant 0 : index
    %49 = vector.load %arg5[%c0_24, %c0_25] : memref<384x128xf32, #tpu.memory_space<vmem>>, vector<384x128xf32>
    %cst_26 = arith.constant dense<0.000000e+00> : vector<32x128xf32>
    %50 = tpu.matmul %48, %49, %cst_26 {dimension_numbers = #tpu.dot_dimension_numbers<[1], [0], [0], [1], [0, 0, 1, 1], [], []>} : vector<32x384xf32>, vector<384x128xf32>, vector<32x128xf32> -> vector<32x128xf32>
    %51 = vector.broadcast %10 : vector<1x128xf32> to vector<32x128xf32>
    %52 = arith.addf %50, %51 : vector<32x128xf32>
    %cst_27 = arith.constant dense<0.000000e+00> : vector<2x128xf32>
    %53 = tpu.matmul %8, %52, %cst_27 {dimension_numbers = #tpu.dot_dimension_numbers<[1], [0], [0], [1], [0, 0, 1, 1], [], []>} : vector<2x32xf32>, vector<32x128xf32>, vector<2x128xf32> -> vector<2x128xf32>
    %cst_28 = arith.constant dense<0.000000e+00> : vector<2x4xf32>
    %54 = tpu.matmul %53, %6, %cst_28 {dimension_numbers = #tpu.dot_dimension_numbers<[1], [0], [0], [1], [0, 0, 1, 1], [], []>} : vector<2x128xf32>, vector<128x4xf32>, vector<2x4xf32> -> vector<2x4xf32>
    %cst_29 = arith.constant dense<0.000000e+00> : vector<2x128xf32>
    %55 = tpu.matmul %54, %7, %cst_29 {dimension_numbers = #tpu.dot_dimension_numbers<[1], [0], [0], [1], [0, 0, 1, 1], [], []>} : vector<2x4xf32>, vector<4x128xf32>, vector<2x128xf32> -> vector<2x128xf32>
    %cst_30 = arith.constant dense<0.000000e+00> : vector<32x128xf32>
    %56 = tpu.matmul %9, %55, %cst_30 {dimension_numbers = #tpu.dot_dimension_numbers<[1], [0], [0], [1], [0, 0, 1, 1], [], []>} : vector<32x2xf32>, vector<2x128xf32>, vector<32x128xf32> -> vector<32x128xf32>
    %57 = arith.subf %52, %56 : vector<32x128xf32>
    %58 = arith.mulf %57, %57 : vector<32x128xf32>
    %cst_31 = arith.constant dense<0.000000e+00> : vector<2x128xf32>
    %59 = tpu.matmul %8, %58, %cst_31 {dimension_numbers = #tpu.dot_dimension_numbers<[1], [0], [0], [1], [0, 0, 1, 1], [], []>} : vector<2x32xf32>, vector<32x128xf32>, vector<2x128xf32> -> vector<2x128xf32>
    %cst_32 = arith.constant dense<0.000000e+00> : vector<2x4xf32>
    %60 = tpu.matmul %59, %6, %cst_32 {dimension_numbers = #tpu.dot_dimension_numbers<[1], [0], [0], [1], [0, 0, 1, 1], [], []>} : vector<2x128xf32>, vector<128x4xf32>, vector<2x4xf32> -> vector<2x4xf32>
    %cst_33 = arith.constant dense<0.000000e+00> : vector<2x128xf32>
    %61 = tpu.matmul %60, %7, %cst_33 {dimension_numbers = #tpu.dot_dimension_numbers<[1], [0], [0], [1], [0, 0, 1, 1], [], []>} : vector<2x4xf32>, vector<4x128xf32>, vector<2x128xf32> -> vector<2x128xf32>
    %cst_34 = arith.constant 9.99999974E-6 : f32
    %62 = vector.broadcast %cst_34 : f32 to vector<2x128xf32>
    %63 = arith.addf %61, %62 : vector<2x128xf32>
    %64 = math.rsqrt %63 : vector<2x128xf32>
    %65 = vector.broadcast %11 : vector<1x128xf32> to vector<2x128xf32>
    %66 = arith.mulf %65, %64 : vector<2x128xf32>
    %cst_35 = arith.constant dense<0.000000e+00> : vector<32x128xf32>
    %67 = tpu.matmul %9, %66, %cst_35 {dimension_numbers = #tpu.dot_dimension_numbers<[1], [0], [0], [1], [0, 0, 1, 1], [], []>} : vector<32x2xf32>, vector<2x128xf32>, vector<32x128xf32> -> vector<32x128xf32>
    %68 = arith.mulf %57, %67 : vector<32x128xf32>
    %69 = vector.broadcast %12 : vector<1x128xf32> to vector<32x128xf32>
    %70 = arith.addf %68, %69 : vector<32x128xf32>
    %71 = arith.negf %70 : vector<32x128xf32>
    %72 = math.exp %71 : vector<32x128xf32>
    %cst_36 = arith.constant 1.000000e+00 : f32
    %73 = vector.broadcast %cst_36 : f32 to vector<32x128xf32>
    %74 = arith.addf %73, %72 : vector<32x128xf32>
    %75 = arith.divf %73, %74 : vector<32x128xf32>
    %76 = arith.mulf %70, %75 : vector<32x128xf32>
    %c0_37 = arith.constant 0 : index
    %c0_38 = arith.constant 0 : index
    %77 = vector.load %arg10[%c0_37, %c0_38] : memref<1x128xf32, #tpu.memory_space<vmem>>, vector<1x128xf32>
    %c0_39 = arith.constant 0 : index
    %c0_40 = arith.constant 0 : index
    %78 = vector.load %arg11[%c0_39, %c0_40] : memref<1x128xf32, #tpu.memory_space<vmem>>, vector<1x128xf32>
    %c0_41 = arith.constant 0 : index
    %c0_42 = arith.constant 0 : index
    %79 = vector.load %arg12[%c0_41, %c0_42] : memref<1x128xf32, #tpu.memory_space<vmem>>, vector<1x128xf32>
    %cst_43 = arith.constant 0.000000e+00 : f32
    %80 = vector.broadcast %cst_43 : f32 to vector<1x128xf32>
    %81 = tpu.concatenate %80, %76, %80 in 0 : vector<1x128xf32>, vector<32x128xf32>, vector<1x128xf32> -> vector<34x128xf32>
    %82 = vector.extract_strided_slice %81 {offsets = [0, 0], sizes = [32, 128], strides = [1, 1]} : vector<34x128xf32> to vector<32x128xf32>
    %83 = vector.extract_strided_slice %81 {offsets = [2, 0], sizes = [32, 128], strides = [1, 1]} : vector<34x128xf32> to vector<32x128xf32>
    %84 = tpu.iota {dimensions = array<i32: 0>} : vector<32x1xi32>
    %c16_i32_44 = arith.constant 16 : i32
    %c0_i32_45 = arith.constant 0 : i32
    %85 = arith.cmpi eq, %c16_i32_44, %c0_i32_45 : i32
    %c1_i32_46 = arith.constant 1 : i32
    %86 = arith.select %85, %c1_i32_46, %c16_i32_44 : i32
    %87 = vector.broadcast %86 : i32 to vector<32x1xi32>
    %88 = arith.remsi %84, %87 : vector<32x1xi32>
    %c0_i32_47 = arith.constant 0 : i32
    %89 = vector.broadcast %c0_i32_47 : i32 to vector<32x1xi32>
    %90 = arith.cmpi ne, %88, %89 : vector<32x1xi32>
    %c0_i32_48 = arith.constant 0 : i32
    %91 = vector.broadcast %c0_i32_48 : i32 to vector<32x1xi32>
    %92 = arith.cmpi slt, %88, %91 : vector<32x1xi32>
    %c0_i32_49 = arith.constant 0 : i32
    %93 = arith.cmpi slt, %86, %c0_i32_49 : i32
    %94 = vector.broadcast %93 : i1 to vector<32x1xi1>
    %95 = vector.broadcast %94 : vector<32x1xi1> to vector<32x1xi1>
    %96 = arith.xori %92, %95 : vector<32x1xi1>
    %97 = arith.andi %96, %90 : vector<32x1xi1>
    %98 = vector.broadcast %86 : i32 to vector<32x1xi32>
    %99 = arith.addi %88, %98 : vector<32x1xi32>
    %100 = arith.select %97, %99, %88 : vector<32x1xi1>, vector<32x1xi32>
    %c0_i32_50 = arith.constant 0 : i32
    %101 = vector.broadcast %c0_i32_50 : i32 to vector<32x1xi32>
    %102 = arith.cmpi eq, %100, %101 : vector<32x1xi32>
    %103 = vector.shape_cast %102 : vector<32x1xi1> to vector<32x1xi1>
    %104 = vector.broadcast %103 : vector<32x1xi1> to vector<32x128xi1>
    %105 = vector.shape_cast %80 : vector<1x128xf32> to vector<1x128xf32>
    %106 = vector.broadcast %105 : vector<1x128xf32> to vector<32x128xf32>
    %107 = arith.select %104, %106, %82 : vector<32x128xi1>, vector<32x128xf32>
    %c15_i32_51 = arith.constant 15 : i32
    %108 = vector.broadcast %c15_i32_51 : i32 to vector<32x1xi32>
    %109 = arith.cmpi eq, %100, %108 : vector<32x1xi32>
    %110 = vector.shape_cast %109 : vector<32x1xi1> to vector<32x1xi1>
    %111 = vector.broadcast %110 : vector<32x1xi1> to vector<32x128xi1>
    %112 = vector.shape_cast %80 : vector<1x128xf32> to vector<1x128xf32>
    %113 = vector.broadcast %112 : vector<1x128xf32> to vector<32x128xf32>
    %114 = arith.select %111, %113, %83 : vector<32x128xi1>, vector<32x128xf32>
    %115 = tpu.concatenate %107, %76, %114 in 1 : vector<32x128xf32>, vector<32x128xf32>, vector<32x128xf32> -> vector<32x384xf32>
    %c0_52 = arith.constant 0 : index
    %c0_53 = arith.constant 0 : index
    %116 = vector.load %arg9[%c0_52, %c0_53] : memref<384x128xf32, #tpu.memory_space<vmem>>, vector<384x128xf32>
    %cst_54 = arith.constant dense<0.000000e+00> : vector<32x128xf32>
    %117 = tpu.matmul %115, %116, %cst_54 {dimension_numbers = #tpu.dot_dimension_numbers<[1], [0], [0], [1], [0, 0, 1, 1], [], []>} : vector<32x384xf32>, vector<384x128xf32>, vector<32x128xf32> -> vector<32x128xf32>
    %118 = vector.broadcast %77 : vector<1x128xf32> to vector<32x128xf32>
    %119 = arith.addf %117, %118 : vector<32x128xf32>
    %cst_55 = arith.constant dense<0.000000e+00> : vector<2x128xf32>
    %120 = tpu.matmul %8, %119, %cst_55 {dimension_numbers = #tpu.dot_dimension_numbers<[1], [0], [0], [1], [0, 0, 1, 1], [], []>} : vector<2x32xf32>, vector<32x128xf32>, vector<2x128xf32> -> vector<2x128xf32>
    %cst_56 = arith.constant dense<0.000000e+00> : vector<2x4xf32>
    %121 = tpu.matmul %120, %6, %cst_56 {dimension_numbers = #tpu.dot_dimension_numbers<[1], [0], [0], [1], [0, 0, 1, 1], [], []>} : vector<2x128xf32>, vector<128x4xf32>, vector<2x4xf32> -> vector<2x4xf32>
    %cst_57 = arith.constant dense<0.000000e+00> : vector<2x128xf32>
    %122 = tpu.matmul %121, %7, %cst_57 {dimension_numbers = #tpu.dot_dimension_numbers<[1], [0], [0], [1], [0, 0, 1, 1], [], []>} : vector<2x4xf32>, vector<4x128xf32>, vector<2x128xf32> -> vector<2x128xf32>
    %cst_58 = arith.constant dense<0.000000e+00> : vector<32x128xf32>
    %123 = tpu.matmul %9, %122, %cst_58 {dimension_numbers = #tpu.dot_dimension_numbers<[1], [0], [0], [1], [0, 0, 1, 1], [], []>} : vector<32x2xf32>, vector<2x128xf32>, vector<32x128xf32> -> vector<32x128xf32>
    %124 = arith.subf %119, %123 : vector<32x128xf32>
    %125 = arith.mulf %124, %124 : vector<32x128xf32>
    %cst_59 = arith.constant dense<0.000000e+00> : vector<2x128xf32>
    %126 = tpu.matmul %8, %125, %cst_59 {dimension_numbers = #tpu.dot_dimension_numbers<[1], [0], [0], [1], [0, 0, 1, 1], [], []>} : vector<2x32xf32>, vector<32x128xf32>, vector<2x128xf32> -> vector<2x128xf32>
    %cst_60 = arith.constant dense<0.000000e+00> : vector<2x4xf32>
    %127 = tpu.matmul %126, %6, %cst_60 {dimension_numbers = #tpu.dot_dimension_numbers<[1], [0], [0], [1], [0, 0, 1, 1], [], []>} : vector<2x128xf32>, vector<128x4xf32>, vector<2x4xf32> -> vector<2x4xf32>
    %cst_61 = arith.constant dense<0.000000e+00> : vector<2x128xf32>
    %128 = tpu.matmul %127, %7, %cst_61 {dimension_numbers = #tpu.dot_dimension_numbers<[1], [0], [0], [1], [0, 0, 1, 1], [], []>} : vector<2x4xf32>, vector<4x128xf32>, vector<2x128xf32> -> vector<2x128xf32>
    %cst_62 = arith.constant 9.99999974E-6 : f32
    %129 = vector.broadcast %cst_62 : f32 to vector<2x128xf32>
    %130 = arith.addf %128, %129 : vector<2x128xf32>
    %131 = math.rsqrt %130 : vector<2x128xf32>
    %132 = vector.broadcast %78 : vector<1x128xf32> to vector<2x128xf32>
    %133 = arith.mulf %132, %131 : vector<2x128xf32>
    %cst_63 = arith.constant dense<0.000000e+00> : vector<32x128xf32>
    %134 = tpu.matmul %9, %133, %cst_63 {dimension_numbers = #tpu.dot_dimension_numbers<[1], [0], [0], [1], [0, 0, 1, 1], [], []>} : vector<32x2xf32>, vector<2x128xf32>, vector<32x128xf32> -> vector<32x128xf32>
    %135 = arith.mulf %124, %134 : vector<32x128xf32>
    %136 = vector.broadcast %79 : vector<1x128xf32> to vector<32x128xf32>
    %137 = arith.addf %135, %136 : vector<32x128xf32>
    %138 = arith.negf %137 : vector<32x128xf32>
    %139 = math.exp %138 : vector<32x128xf32>
    %cst_64 = arith.constant 1.000000e+00 : f32
    %140 = vector.broadcast %cst_64 : f32 to vector<32x128xf32>
    %141 = arith.addf %140, %139 : vector<32x128xf32>
    %142 = arith.divf %140, %141 : vector<32x128xf32>
    %143 = arith.mulf %137, %142 : vector<32x128xf32>
    %c2_i32 = arith.constant 2 : i32
    %144 = arith.muli %arg0, %c2_i32 : i32
    %145 = arith.index_cast %144 : i32 to index
    %c0_65 = arith.constant 0 : index
    %146 = vector.load %arg2[%145, %c0_65] : memref<2x32xf32, #tpu.memory_space<vmem>>, vector<2x32xf32>
    %c0_66 = arith.constant 0 : index
    %c0_67 = arith.constant 0 : index
    %147 = vector.load %arg17[%c0_66, %c0_67] : memref<32x128xf32, #tpu.memory_space<vmem>>, vector<32x128xf32>
    %cst_68 = arith.constant dense<0.000000e+00> : vector<2x128xf32>
    %148 = tpu.matmul %146, %147, %cst_68 {dimension_numbers = #tpu.dot_dimension_numbers<[1], [0], [0], [1], [0, 0, 1, 1], [], []>} : vector<2x32xf32>, vector<32x128xf32>, vector<2x128xf32> -> vector<2x128xf32>
    %c0_69 = arith.constant 0 : index
    %c0_70 = arith.constant 0 : index
    %149 = vector.load %arg18[%c0_69, %c0_70] : memref<1x128xf32, #tpu.memory_space<vmem>>, vector<1x128xf32>
    %150 = vector.broadcast %149 : vector<1x128xf32> to vector<2x128xf32>
    %151 = arith.addf %148, %150 : vector<2x128xf32>
    %152 = arith.negf %151 : vector<2x128xf32>
    %153 = math.exp %152 : vector<2x128xf32>
    %cst_71 = arith.constant 1.000000e+00 : f32
    %154 = vector.broadcast %cst_71 : f32 to vector<2x128xf32>
    %155 = arith.addf %154, %153 : vector<2x128xf32>
    %156 = arith.divf %154, %155 : vector<2x128xf32>
    %157 = arith.mulf %151, %156 : vector<2x128xf32>
    %cst_72 = arith.constant 1.000000e+00 : f32
    %158 = vector.broadcast %cst_72 : f32 to vector<2x128xf32>
    %159 = arith.addf %157, %158 : vector<2x128xf32>
    %cst_73 = arith.constant dense<0.000000e+00> : vector<32x128xf32>
    %160 = tpu.matmul %9, %159, %cst_73 {dimension_numbers = #tpu.dot_dimension_numbers<[1], [0], [0], [1], [0, 0, 1, 1], [], []>} : vector<32x2xf32>, vector<2x128xf32>, vector<32x128xf32> -> vector<32x128xf32>
    %161 = arith.mulf %143, %160 : vector<32x128xf32>
    %162 = arith.addf %161, %5 : vector<32x128xf32>
    %c0_74 = arith.constant 0 : index
    %c0_75 = arith.constant 0 : index
    %163 = vector.load %arg19[%c0_74, %c0_75] : memref<32x128xf32, #tpu.memory_space<vmem>>, vector<32x128xf32>
    tpu.vector_store %arg19[%c0_74, %c0_75], %162 {strides = array<i32>} : memref<32x128xf32, #tpu.memory_space<vmem>>, vector<32x128xf32>,
    return
  }
  func.func @transform_0(%arg0: i32) -> (i32, i32) {
    %c0_i32 = arith.constant 0 : i32
    %c0_i32_0 = arith.constant 0 : i32
    return %arg0, %c0_i32 : i32, i32
  }
  func.func @transform_1(%arg0: i32) -> (i32, i32) {
    %c0_i32 = arith.constant 0 : i32
    %c0_i32_0 = arith.constant 0 : i32
    %c0_i32_1 = arith.constant 0 : i32
    return %c0_i32, %c0_i32_0 : i32, i32
  }
  func.func @transform_2(%arg0: i32) -> (i32, i32) {
    %c0_i32 = arith.constant 0 : i32
    %c0_i32_0 = arith.constant 0 : i32
    %c0_i32_1 = arith.constant 0 : i32
    return %c0_i32, %c0_i32_0 : i32, i32
  }
  func.func @transform_3(%arg0: i32) -> (i32, i32) {
    %c0_i32 = arith.constant 0 : i32
    %c0_i32_0 = arith.constant 0 : i32
    %c0_i32_1 = arith.constant 0 : i32
    return %c0_i32, %c0_i32_0 : i32, i32
  }
  func.func @transform_4(%arg0: i32) -> (i32, i32) {
    %c0_i32 = arith.constant 0 : i32
    %c0_i32_0 = arith.constant 0 : i32
    %c0_i32_1 = arith.constant 0 : i32
    return %c0_i32, %c0_i32_0 : i32, i32
  }
  func.func @transform_5(%arg0: i32) -> (i32, i32) {
    %c0_i32 = arith.constant 0 : i32
    %c0_i32_0 = arith.constant 0 : i32
    %c0_i32_1 = arith.constant 0 : i32
    return %c0_i32, %c0_i32_0 : i32, i32
  }
  func.func @transform_6(%arg0: i32) -> (i32, i32) {
    %c0_i32 = arith.constant 0 : i32
    %c0_i32_0 = arith.constant 0 : i32
    %c0_i32_1 = arith.constant 0 : i32
    return %c0_i32, %c0_i32_0 : i32, i32
  }
  func.func @transform_7(%arg0: i32) -> (i32, i32) {
    %c0_i32 = arith.constant 0 : i32
    %c0_i32_0 = arith.constant 0 : i32
    %c0_i32_1 = arith.constant 0 : i32
    return %c0_i32, %c0_i32_0 : i32, i32
  }
  func.func @transform_8(%arg0: i32) -> (i32, i32) {
    %c0_i32 = arith.constant 0 : i32
    %c0_i32_0 = arith.constant 0 : i32
    %c0_i32_1 = arith.constant 0 : i32
    return %c0_i32, %c0_i32_0 : i32, i32
  }
  func.func @transform_9(%arg0: i32) -> (i32, i32) {
    %c0_i32 = arith.constant 0 : i32
    %c0_i32_0 = arith.constant 0 : i32
    %c0_i32_1 = arith.constant 0 : i32
    return %c0_i32, %c0_i32_0 : i32, i32
  }
  func.func @transform_10(%arg0: i32) -> (i32, i32) {
    %c0_i32 = arith.constant 0 : i32
    %c0_i32_0 = arith.constant 0 : i32
    %c0_i32_1 = arith.constant 0 : i32
    return %c0_i32, %c0_i32_0 : i32, i32
  }
  func.func @transform_11(%arg0: i32) -> (i32, i32) {
    %c0_i32 = arith.constant 0 : i32
    %c0_i32_0 = arith.constant 0 : i32
    %c0_i32_1 = arith.constant 0 : i32
    return %c0_i32, %c0_i32_0 : i32, i32
  }
  func.func @transform_12(%arg0: i32) -> (i32, i32) {
    %c0_i32 = arith.constant 0 : i32
    %c0_i32_0 = arith.constant 0 : i32
    %c0_i32_1 = arith.constant 0 : i32
    return %c0_i32, %c0_i32_0 : i32, i32
  }
  func.func @transform_13(%arg0: i32) -> (i32, i32) {
    %c0_i32 = arith.constant 0 : i32
    %c0_i32_0 = arith.constant 0 : i32
    %c0_i32_1 = arith.constant 0 : i32
    return %c0_i32, %c0_i32_0 : i32, i32
  }
  func.func @transform_14(%arg0: i32) -> (i32, i32) {
    %c0_i32 = arith.constant 0 : i32
    %c0_i32_0 = arith.constant 0 : i32
    %c0_i32_1 = arith.constant 0 : i32
    return %c0_i32, %c0_i32_0 : i32, i32
  }
  func.func @transform_15(%arg0: i32) -> (i32, i32) {
    %c0_i32 = arith.constant 0 : i32
    %c0_i32_0 = arith.constant 0 : i32
    %c0_i32_1 = arith.constant 0 : i32
    return %c0_i32, %c0_i32_0 : i32, i32
  }
  func.func @transform_16(%arg0: i32) -> (i32, i32) {
    %c0_i32 = arith.constant 0 : i32
    %c0_i32_0 = arith.constant 0 : i32
    %c0_i32_1 = arith.constant 0 : i32
    return %c0_i32, %c0_i32_0 : i32, i32
  }
  func.func @transform_17(%arg0: i32) -> (i32, i32) {
    %c0_i32 = arith.constant 0 : i32
    %c0_i32_0 = arith.constant 0 : i32
    %c0_i32_1 = arith.constant 0 : i32
    return %c0_i32, %c0_i32_0 : i32, i32
  }
  func.func @transform_18(%arg0: i32) -> (i32, i32) {
    %c0_i32 = arith.constant 0 : i32
    %c0_i32_0 = arith.constant 0 : i32
    return %arg0, %c0_i32 : i32, i32
  }
}

</mosaic_0001>

<bundles_post_ra>
// kernel: tpu_custom_call.1
= control target key start
LH: loop header
LB: loop body
LE: loop exit
PB: predicated region body
PF: predicated region fallthrough
CT: control target
= control target key end

     0   :  { %s4092_s0 = inlined_call_operand.vmem [shape: f32[32,64], index: 0, kind: input, shape index: {}]   ;;  %s4093_s1 = inlined_call_operand.vmem [shape: f32[2,32], index: 1, kind: input, shape index: {}]   ;;  %s4094_s2 = inlined_call_operand.vmem [shape: f32[64,128], index: 2, kind: input, shape index: {}]   ;;  %s4095_s3 = inlined_call_operand.vmem [shape: f32[1,128], index: 3, kind: input, shape index: {}]   ;;  %s4096_s4 = inlined_call_operand.hbm [shape: f32[384,128], index: 4, kind: input, shape index: {}]   ;;  %s4097_s5 = inlined_call_operand.vmem [shape: f32[1,128], index: 5, kind: input, shape index: {}]   ;;  %s4098_s6 = inlined_call_operand.vmem [shape: f32[1,128], index: 6, kind: input, shape index: {}]   ;;  %s4099_s7 = inlined_call_operand.vmem [shape: f32[1,128], index: 7, kind: input, shape index: {}]   ;;  %s4100_s8 = inlined_call_operand.hbm [shape: f32[384,128], index: 8, kind: input, shape index: {}]   ;;  %s4101_s9 = inlined_call_operand.vmem [shape: f32[1,128], index: 9, kind: input, shape index: {}]   ;;  %s4102_s10 = inlined_call_operand.vmem [shape: f32[1,128], index: 10, kind: input, shape index: {}]   ;;  %s4103_s11 = inlined_call_operand.vmem [shape: f32[1,128], index: 11, kind: input, shape index: {}]   ;;  %s4104_s12 = inlined_call_operand.vmem [shape: f32[128,4], index: 12, kind: input, shape index: {}]   ;;  %s4105_s13 = inlined_call_operand.vmem [shape: f32[4,128], index: 13, kind: input, shape index: {}]   ;;  %s4106_s14 = inlined_call_operand.vmem [shape: f32[2,32], index: 14, kind: input, shape index: {}]   ;;  %s4107_s15 = inlined_call_operand.vmem [shape: f32[32,2], index: 15, kind: input, shape index: {}]   ;;  %s4108_s16 = inlined_call_operand.vmem [shape: f32[32,128], index: 16, kind: input, shape index: {}]   ;;  %s4109_s17 = inlined_call_operand.vmem [shape: f32[1,128], index: 17, kind: input, shape index: {}]   ;;  %s4110_s18 = inlined_call_operand.hbm [shape: f32[32,128], index: 18, kind: output, shape index: {}]  }
   0x1   :  { %4113 = sst [smem:[#allocation11_spill]] %s4092_s0 }
   0x2   :  { %4114 = sst [smem:[#allocation12_spill]] %s4093_s1 }
   0x3   :  { %4115 = sst [smem:[#allocation13_spill]] %s4094_s2 }
   0x4   :  { %23 = vsyncpa [#allocation3], 0 }
   0x5   :  { %24 = vsyncpa [#allocation6], 0 }
   0x6   :  { %25 = vsyncpa [#allocation4], 0  ;;  %s3486_s27 = smov [#allocation2]   ;;  %s3414_s0 = scalar_lea.hbm %s4096_s4, 6144 }
   0x7   :  { %s39_s28 = sshll.u32 %s3486_s27, 4  ;;  %p3415_p0 = scmp.ne.s32.totalorder %s4096_s4, %s3414_s0  ;;  %s40_s28 = int_to_ptr.vmem [resolvable:$true] %s39_s28 }
   0x8   :  { %p3418_p1 = scmp.lt.u32.totalorder %s3414_s0, %s4096_s4 }
   0xa   :  { %p3420_p2 = pnand %p3418_p1, %p3415_p0 }
   0xc   :  { %3423 = shalt.err (!%p3420_p2)
}
   0xd   :  { %s3424_s22 = scalar_lea.vmem %s40_s28, 6144  ;;  %p3429_p4 = scmp.lt.s32.totalorder %s40_s28, %s40_s28 }
   0xe   :  { %p3425_p3 = scmp.ne.s32.totalorder %s40_s28, %s3424_s22  ;;  %p3430_p5 = scmp.lt.s32.totalorder %s3424_s22, %s3424_s22 }
  0x10   :  { %p3431_p6 = por %p3430_p5, %p3429_p4 }
  0x12   :  { %p3432_p7 = pnand %p3431_p6, %p3425_p3 }
  0x14   :  { %3435 = shalt.err (!%p3432_p7)
}
  0x15   :  { %s3487_s2 = smov 128   ;;  %s3488_s23 = smov 8  }
  0x16   :  { %45 = dma.hbm_to_vmem [thread:$0]  %s4096_s4, 6144, %s40_s28, [#allocation3], %s3487_s2, %s3487_s2, %s3488_s23  }
  0x17   :  { %s3489_s26 = smov [#allocation5]   ;;  %s3436_s0 = scalar_lea.hbm %s4100_s8, 6144 }
  0x18   :  { %s57_s27 = sshll.u32 %s3489_s26, 4  ;;  %p3437_p8 = scmp.ne.s32.totalorder %s4100_s8, %s3436_s0  ;;  %s58_s27 = int_to_ptr.vmem [resolvable:$true] %s57_s27 }
  0x19   :  { %p3440_p9 = scmp.lt.u32.totalorder %s3436_s0, %s4100_s8 }
  0x1b   :  { %p3442_p10 = pnand %p3440_p9, %p3437_p8 }
  0x1d   :  { %3445 = shalt.err (!%p3442_p10)
}
  0x1e   :  { %s3446_s22 = scalar_lea.vmem %s58_s27, 6144  ;;  %p3451_p12 = scmp.lt.s32.totalorder %s58_s27, %s58_s27 }
  0x1f   :  { %p3447_p11 = scmp.ne.s32.totalorder %s58_s27, %s3446_s22  ;;  %p3452_p13 = scmp.lt.s32.totalorder %s3446_s22, %s3446_s22 }
  0x21   :  { %p3453_p0 = por %p3452_p13, %p3451_p12 }
  0x23   :  { %p3454_p1 = pnand %p3453_p0, %p3447_p11 }
  0x25   :  { %3457 = shalt.err (!%p3454_p1)
}
  0x26   :  { %63 = dma.hbm_to_vmem [thread:$0]  %s4100_s8, 6144, %s58_s27, [#allocation6], %s3487_s2, %s3487_s2, %s3488_s23  }
  0x27   :  { %3480 = dma.done.wait [#allocation3], 6144  }
  0x28   :  { %3481 = vsyncadd [#allocation3], 4294961152 }
  0x29   :  { %3482 = dma.done.wait [#allocation6], 6144  }
  0x2a   :  { %3483 = vsyncadd [#allocation6], 4294961152  ;;  %s4116_s26 = sld [smem:[#allocation13_spill]]  ;;  %vm107_vm0 = vcmask 523264   ;;  %s4117_s24 = sld [smem:[#allocation11_spill]]  ;;  %v366_v10 = vld [vmem:[#allocation2 + $0x80] sm:$0xff] }
  0x2b   :  { %v367_v11 = vld [vmem:[#allocation2 + $0x88] sm:$0xff]  ;;  %v350_v12 = vld [vmem:[#allocation2] sm:$0xff]  ;;  %v368_v16 = vld [vmem:[#allocation2 + $0x90] sm:$0xff]  ;;  %vm234_vm1 = vcmask 1040384   ;;  %vm332_vm3 = vcmask 1045504   ;;  %vm3491_vm7 = vmmov 0  }
  0x2c   :  { %v3112_v14 = vpack.c.bf16 %v367_v11, %v366_v10  ;;  %v351_v15 = vld [vmem:[#allocation2 + $0x8] sm:$0xff]  ;;  %v369_v17 = vld [vmem:[#allocation2 + $0x98] sm:$0xff]  ;;  %v352_v21 = vld [vmem:[#allocation2 + $0x10] sm:$0xff]  ;;  %vm574_vm8 = vcmask 261120   ;;  %vm722_vm9 = vcmask 1043456   ;;  %vm718_vm10 = vcmask 31744  }
  0x2d   :  { %v3114_v19 = vpack.c.bf16 %v351_v15, %v350_v12  ;;  %v3116_v20 = vpack.c.bf16 %v369_v17, %v368_v16  ;;  %v353_v22 = vld [vmem:[#allocation2 + $0x18] sm:$0xff]  ;;  %v370_v23 = vld [vmem:[#allocation2 + $0xa0] sm:$0xff]  ;;  %v371_v24 = vld [vmem:[#allocation2 + $0xa8] sm:$0xff]  ;;  %vm796_vm11 = vcmask 15360   ;;  %vm809_vm12 = vcmask 1041408  }
  0x2e   :  { %3113 = vmatprep.subr.bf16.mxu1 %v3112_v14  ;;  %v3118_v25 = vpack.c.bf16 %v353_v22, %v352_v21  ;;  %v382_v27 = vld [vmem:[#allocation2 + $0x100] sm:$0xff]  ;;  %v3120_v28 = vpack.c.bf16 %v371_v24, %v370_v23  ;;  %v355_v30 = vld [vmem:[#allocation2 + $0x28] sm:$0xff]  ;;  %v372_v32 = vld [vmem:[#allocation2 + $0xb0] sm:$0xff]  ;;  %v249_v24 = vlaneseq }
  0x2f   :  { %3115 = vmatpush3.bf16.msra.mxu1 %v3114_v19  ;;  %v354_v29 = vld [vmem:[#allocation2 + $0x20] sm:$0xff]  ;;  %v383_v31 = vld [vmem:[#allocation2 + $0x108] sm:$0xff]  ;;  %v373_v33 = vld [vmem:[#allocation2 + $0xb8] sm:$0xff] }
  0x30   :  { %v92_v0 = vld [vmem:[%s4116_s26] sm:$0xff]  ;;  %v93_v1 = vld [vmem:[%s4116_s26 + $0x8] sm:$0xff]  ;;  %v94_v2 = vld [vmem:[%s4116_s26 + $0x10] sm:$0xff]  ;;  %3117 = vmatprep.subr.bf16.mxu1 %v3116_v20  ;;  %v3122_v34 = vpack.c.bf16 %v355_v30, %v354_v29  ;;  %v3144_v35 = vpack.c.bf16 %v383_v31, %v382_v27  ;;  %v3124_v37 = vpack.c.bf16 %v373_v33, %v372_v32 }
  0x31   :  { %v3096_v3 = vpack.c.bf16 %v93_v1, %v92_v0  ;;  %v95_v4 = vld [vmem:[%s4116_s26 + $0x18] sm:$0xff]  ;;  %v96_v6 = vld [vmem:[%s4116_s26 + $0x20] sm:$0xff]  ;;  %v97_v7 = vld [vmem:[%s4116_s26 + $0x28] sm:$0xff] }
  0x32   :  { %v3100_v5 = vpack.c.bf16 %v95_v4, %v94_v2  ;;  %v88_v8 = vld [vmem:[%s4117_s24] sm:$0xff]  ;;  %v98_v9 = vld [vmem:[%s4116_s26 + $0x30] sm:$0xff]  ;;  %v3104_v13 = vpack.c.bf16 %v97_v7, %v96_v6  ;;  %v99_v18 = vld [vmem:[%s4116_s26 + $0x38] sm:$0xff] }
  0x33   :  { %3097 = vmatprep.subr.bf16.mxu0 %v3096_v3  ;;  %2759 = vmatprep.mubr.msk.f32.mxu0 %vm107_vm0, %v88_v8  ;;  %v3108_v26 = vpack.c.bf16 %v99_v18, %v98_v9  ;;  %v384_v36 = vld [vmem:[#allocation2 + $0x110] sm:$0xff]  ;;  %v385_v38 = vld [vmem:[#allocation2 + $0x118] sm:$0xff]  ;;  %v374_v41 = vld [vmem:[#allocation2 + $0xc0] sm:$0xff] }
  0x34   :  { %3099 = vmatpush3.bf16.msra.mxu0 %v3096_v3  ;;  %3119 = vmatpush3.bf16.msra.mxu1 %v3118_v25  ;;  %v356_v39 = vld [vmem:[#allocation2 + $0x30] sm:$0xff]  ;;  %v357_v40 = vld [vmem:[#allocation2 + $0x38] sm:$0xff]  ;;  %v375_v42 = vld [vmem:[#allocation2 + $0xc8] sm:$0xff]  ;;  %v3148_v45 = vpack.c.bf16 %v385_v38, %v384_v36  ;;  %v250_v25 = vshrl.u32 %v249_v24, 7 }
  0x35   :  { %3101 = vmatprep.subr.bf16.mxu0 %v3100_v5  ;;  %3121 = vmatprep.subr.bf16.mxu1 %v3120_v28  ;;  %v89_v43 = vld [vmem:[%s4117_s24 + $0x8] sm:$0xff]  ;;  %v90_v44 = vld [vmem:[%s4117_s24 + $0x10] sm:$0xff]  ;;  %v3126_v46 = vpack.c.bf16 %v357_v40, %v356_v39  ;;  %v386_v47 = vld [vmem:[#allocation2 + $0x120] sm:$0xff]  ;;  %v3128_v49 = vpack.c.bf16 %v375_v42, %v374_v41 }
  0x36   :  { %v387_v48 = vld [vmem:[#allocation2 + $0x128] sm:$0xff]  ;;  %v358_v50 = vld [vmem:[#allocation2 + $0x40] sm:$0xff]  ;;  %v376_v52 = vld [vmem:[#allocation2 + $0xd0] sm:$0xff]  ;;  %v258_v28 = vand.u32 15, %v250_v25  ;;  %v251_v32 = vadd.s32 8, %v250_v25 }
  0x37   :  { %v359_v51 = vld [vmem:[#allocation2 + $0x48] sm:$0xff]  ;;  %v377_v53 = vld [vmem:[#allocation2 + $0xd8] sm:$0xff]  ;;  %v3152_v55 = vpack.c.bf16 %v387_v48, %v386_v47  ;;  %v388_v57 = vld [vmem:[#allocation2 + $0x130] sm:$0xff]  ;;  %v253_v47 = vadd.s32 24, %v250_v25 }
  0x38   :  { %3103 = vmatpush3.bf16.msra.mxu0 %v3100_v5  ;;  %3123 = vmatpush3.bf16.msra.mxu1 %v3122_v34  ;;  %v91_v54 = vld [vmem:[%s4117_s24 + $0x18] sm:$0xff]  ;;  %v3130_v56 = vpack.c.bf16 %v359_v51, %v358_v50  ;;  %v3132_v59 = vpack.c.bf16 %v377_v53, %v376_v52  ;;  %v360_v60 = vld [vmem:[#allocation2 + $0x50] sm:$0xff]  ;;  %v378_v62 = vld [vmem:[#allocation2 + $0xe0] sm:$0xff]  ;;  %vm3669_vm2 = vcmp.ne.s32.totalorder %v258_v28, 0 }
  0x39   :  { %3105 = vmatprep.subr.bf16.mxu0 %v3104_v13  ;;  %3125 = vmatprep.subr.bf16.mxu1 %v3124_v37  ;;  %v389_v58 = vld [vmem:[#allocation2 + $0x138] sm:$0xff]  ;;  %v379_v63 = vld [vmem:[#allocation2 + $0xe8] sm:$0xff]  ;;  %v390_v2 = vld [vmem:[#allocation2 + $0x140] sm:$0xff]  ;;  %v252_v37 = vadd.s32 16, %v250_v25 }
  0x3a   :  { %v361_v61 = vld [vmem:[#allocation2 + $0x58] sm:$0xff]  ;;  %v3156_v0 = vpack.c.bf16 %v389_v58, %v388_v57  ;;  %v391_v3 = vld [vmem:[#allocation2 + $0x148] sm:$0xff]  ;;  %v3136_v4 = vpack.c.bf16 %v379_v63, %v378_v62  ;;  %v362_v6 = vld [vmem:[#allocation2 + $0x60] sm:$0xff]  ;;  %v279_v58 = vand.u32 15, %v253_v47 }
  0x3b   :  { %v3134_v1 = vpack.c.bf16 %v361_v61, %v360_v60  ;;  %v3160_v5 = vpack.c.bf16 %v391_v3, %v390_v2  ;;  %v363_v7 = vld [vmem:[#allocation2 + $0x68] sm:$0xff]  ;;  %v392_v9 = vld [vmem:[#allocation2 + $0x150] sm:$0xff]  ;;  %v393_v10 = vld [vmem:[#allocation2 + $0x158] sm:$0xff] }
  0x3c   :  { %3107 = vmatpush3.bf16.msra.mxu0 %v3104_v13  ;;  %3127 = vmatpush3.bf16.msra.mxu1 %v3126_v46  ;;  %v3138_v8 = vpack.c.bf16 %v363_v7, %v362_v6  ;;  %v3164_v11 = vpack.c.bf16 %v393_v10, %v392_v9  ;;  %v380_v12 = vld [vmem:[#allocation2 + $0xf0] sm:$0xff]  ;;  %v381_v13 = vld [vmem:[#allocation2 + $0xf8] sm:$0xff]  ;;  %v394_v18 = vld [vmem:[#allocation2 + $0x160] sm:$0xff]  ;;  %vm3704_vm6 = vcmp.ne.s32.totalorder %v279_v58, 15 }
  0x3d   :  { %3109 = vmatprep.subr.bf16.mxu0 %v3108_v26  ;;  %3129 = vmatprep.subr.bf16.mxu1 %v3128_v49  ;;  %v3140_v14 = vpack.c.bf16 %v381_v13, %v380_v12  ;;  %v364_v15 = vld [vmem:[#allocation2 + $0x70] sm:$0xff]  ;;  %v365_v16 = vld [vmem:[#allocation2 + $0x78] sm:$0xff]  ;;  %v395_v19 = vld [vmem:[#allocation2 + $0x168] sm:$0xff]  ;;  %v272_v49 = vand.u32 15, %v252_v37 }
  0x3e   :  { %v3142_v17 = vpack.c.bf16 %v365_v16, %v364_v15  ;;  %v3168_v20 = vpack.c.bf16 %v395_v19, %v394_v18  ;;  %v396_v21 = vld [vmem:[#allocation2 + $0x170] sm:$0xff]  ;;  %v397_v22 = vld [vmem:[#allocation2 + $0x178] sm:$0xff]  ;;  %v205_v2 = vld [vmem:[%s4104_s12] sm:$0xff] }
  0x3f   :  { %v3172_v23 = vpack.c.bf16 %v397_v22, %v396_v21  ;;  %vm3693_vm5 = vcmp.ne.s32.totalorder %v272_v49, 0  ;;  %v206_v3 = vld [vmem:[%s4104_s12 + $0x8] sm:$0xff]  ;;  %v208_v6 = vld [vmem:[%s4104_s12 + $0x18] sm:$0xff] }
  0x40   :  { %3111 = vmatpush3.bf16.msra.mxu0 %v3108_v26  ;;  %3131 = vmatpush3.bf16.msra.mxu1 %v3130_v56  ;;  %v2398_v26 = vld [vmem:[%s4095_s3] ss:$0 sm:$0xff]  ;;  %v210_v9 = vld [vmem:[%s4104_s12 + $0x28] sm:$0xff]  ;;  %v212_v12 = vld [vmem:[%s4104_s12 + $0x38] sm:$0xff] }
  0x41   :  { %3145 = vmatprep.subr.bf16.mxu0 %v3144_v35  ;;  %3133 = vmatprep.subr.bf16.mxu1 %v3132_v59  ;;  %v214_v15 = vld [vmem:[%s4104_s12 + $0x48] sm:$0xff]  ;;  %v216_v18 = vld [vmem:[%s4104_s12 + $0x58] sm:$0xff] }
  0x42   :  { %v218_v21 = vld [vmem:[%s4104_s12 + $0x68] sm:$0xff]  ;;  %v220_v24 = vld [vmem:[%s4104_s12 + $0x78] sm:$0xff] }
  0x43   :  { %2760 = vmatmul.mubr.msk.f32.vlgmr.msra.gmra.mrb[0].mxu0 %vm107_vm0, %v89_v43  ;;  %v265_v43 = vand.u32 15, %v251_v32  ;;  %v2403_v32 = vld [vmem:[%s4097_s5] ss:$0 sm:$0xff] }
  0x44   :  { %2762 = vmatprep.mubr.msk.f32.mxu0 %vm107_vm0, %v90_v44  ;;  %3147 = vmatpush3.bf16.msra.mxu0 %v3144_v35 }
  0x45   :  { %3149 = vmatprep.subr.bf16.mxu0 %v3148_v45  ;;  %3135 = vmatpush3.bf16.msra.mxu1 %v3134_v1  ;;  %vm3687_vm4 = vcmp.ne.s32.totalorder %v265_v43, 15  ;;  %v3492_v1 = vmov 0.0  }
  0x46   :  { %3137 = vmatprep.subr.bf16.mxu1 %v3136_v4  ;;  %v207_v4 = vld [vmem:[%s4104_s12 + $0x10] sm:$0xff] }
  0x47   :  { %2763 = vmatmul.mubr.msk.f32.gmra.mrb[2].mxu0 %vm107_vm0, %v91_v54  ;;  %v3732_v7 = vpack.c.bf16 %v208_v6, %v207_v4  ;;  %v3826_v6 = vld [vmem:[%s4107_s15] sm:$0xff] }
  0x48   :  { %3151 = vmatpush3.bf16.msra.mxu0 %v3148_v45 }
  0x49   :  { %3153 = vmatprep.subr.bf16.mxu0 %v3152_v55  ;;  %3139 = vmatpush3.bf16.msra.mxu1 %v3138_v8  ;;  %v209_v8 = vld [vmem:[%s4104_s12 + $0x20] sm:$0xff] }
  0x4a   :  { %3141 = vmatprep.subr.bf16.mxu1 %v3140_v14  ;;  %v3742_v10 = vpack.c.bf16 %v210_v9, %v209_v8  ;;  %v213_v14 = vld [vmem:[%s4104_s12 + $0x40] sm:$0xff]  ;;  %v3833_v9 = vld [vmem:[%s4107_s15 + $0x8] sm:$0xff] }
  0x4b   :  { %v3762_v16 = vpack.c.bf16 %v214_v15, %v213_v14  ;;  %v3850_v14 = vld [vmem:[%s4107_s15 + $0x18] sm:$0xff] }
  0x4c   :  { %3155 = vmatpush3.bf16.msra.mxu0 %v3152_v55 }
  0x4d   :  { %3157 = vmatprep.subr.bf16.mxu0 %v3156_v0  ;;  %3143 = vmatpush3.bf16.msra.mxu1 %v3142_v17  ;;  %v215_v17 = vld [vmem:[%s4104_s12 + $0x50] sm:$0xff] }
  0x4e   :  { %v3772_v19 = vpack.c.bf16 %v216_v18, %v215_v17 }
  0x50   :  { %3159 = vmatpush3.bf16.msra.mxu0 %v3156_v0  ;;  %v3490_v0 = vmov 0.0|0.0  }
  0x51   :  { %3161 = vmatprep.subr.bf16.mxu0 %v3160_v5  ;;  %3176 = vmatprep.subr.bf16.mxu1 %v3490_v0 }
  0x54   :  { %3163 = vmatpush3.bf16.msra.mxu0 %v3160_v5  ;;  %v3726_v5 = vpack.c.bf16 %v206_v3, %v205_v2  ;;  %v3816_v2 = vld [vmem:[%s4105_s13] sm:$0xf] }
  0x55   :  { %3165 = vmatprep.subr.bf16.mxu0 %v3164_v11 }
  0x58   :  { %3167 = vmatpush3.bf16.msra.mxu0 %v3164_v11  ;;  %v211_v11 = vld [vmem:[%s4104_s12 + $0x30] sm:$0xff] }
  0x59   :  { %3169 = vmatprep.subr.bf16.mxu0 %v3168_v20  ;;  %v3752_v13 = vpack.c.bf16 %v212_v12, %v211_v11  ;;  %v3839_v12 = vld [vmem:[%s4107_s15 + $0x10] sm:$0xff] }
  0x5c   :  { %3171 = vmatpush3.bf16.msra.mxu0 %v3168_v20  ;;  %v217_v20 = vld [vmem:[%s4104_s12 + $0x60] sm:$0xff] }
  0x5d   :  { %3173 = vmatprep.subr.bf16.mxu0 %v3172_v23  ;;  %v3782_v22 = vpack.c.bf16 %v218_v21, %v217_v20 }
  0x60   :  { %3175 = vmatpush3.bf16.msra.mxu0 %v3172_v23  ;;  %v219_v23 = vld [vmem:[%s4104_s12 + $0x70] sm:$0xff] }
  0x61   :  { %3182 = vmatprep.subr.bf16.mxu0 %v3490_v0  ;;  %v3792_v25 = vpack.c.bf16 %v220_v24, %v219_v23 }
 0x116   :  { %v2761_v27 = vpop.f32.mrb[0].mxu0 }
 0x117   :  { %v3662_v29 = vadd.f32 %v2761_v27, %v2398_v26  ;;  %v186_v30 = vpop.f32.mrb[1].mxu0 }
 0x118   :  { %v3664_v31 = vadd.f32 %v2398_v26, %v186_v30 }
 0x119   :  { %v236_v33 = vrot.slane %v3662_v29, 7 }
 0x11a   :  { %v235_v34 = vrot.slane %v3664_v31, 7  ;;  %v2764_v35 = vpop.f32.mrb[2].mxu0  ;;  %468 = vmatprep.mubr.f32.mxu1 %v3664_v31 }
 0x11b   :  { %v3673_v38 = vadd.f32 %v2764_v35, %v2398_v26  ;;  %v196_v39 = vpop.f32.mrb[3].mxu0 }
 0x11c   :  { %v3675_v40 = vadd.f32 %v2398_v26, %v196_v39  ;;  %v247_v41 = vsel %vm234_vm1, 0.0, %v235_v34  ;;  %v237_v42 = vsel %vm234_vm1, %v235_v34, %v236_v33 }
 0x11d   :  { %v240_v44 = vrot.slane %v3673_v38, 7  ;;  %v333_v45 = vrot.slane %v247_v41, 2  ;;  %2405 = vmatmul.mubr.msk.f32.vlgmr.msra.gmra.mrb[0].mxu1 %vm3669_vm2, %v247_v41  ;;  %v334_v46 = vrot.slane %v237_v42, 2 }
 0x11e   :  { %v238_v48 = vrot.slane %v3675_v40, 7  ;;  %473 = vmatprep.mubr.f32.mxu1 %v3662_v29 }
 0x11f   :  { %v248_v50 = vsel %vm234_vm1, %v240_v44, 0.0  ;;  %v335_v51 = vsel %vm332_vm3, %v333_v45, %v334_v46 }
 0x120   :  { %v239_v52 = vsel %vm234_vm1, %v236_v33, %v238_v48  ;;  %2797 = vmatprep.mubr.f32.mxu0 %v335_v51  ;;  %v241_v54 = vsel %vm234_vm1, %v238_v48, %v240_v44  ;;  %v340_v55 = vrot.slane %v248_v50, 2 }
 0x121   :  { %v336_v56 = vrot.slane %v239_v52, 2  ;;  %474 = vmatmul.mubr.f32.gmra.mrb[2].mxu1 %v237_v42  ;;  %v338_v57 = vrot.slane %v241_v54, 2 }
 0x122   :  { %478 = vmatprep.mubr.f32.mxu1 %v3675_v40 }
 0x123   :  { %v337_v60 = vsel %vm332_vm3, %v334_v46, %v336_v56  ;;  %v339_v61 = vsel %vm332_vm3, %v336_v56, %v338_v57  ;;  %v341_v62 = vsel %vm332_vm3, %v338_v57, %v340_v55 }
 0x124   :  { %2798 = vmatmul.mubr.msk.f32.vlgmr.msra.gmra.mrb[4].mxu0 %vm3687_vm4, %v337_v60  ;;  %v3804_v60 = vld [vmem:[%s4106_s14] sm:$0x3]  ;;  %s4126_s14 = sld [smem:[#allocation12_spill]] }
 0x125   :  { %2407 = vmatmul.mubr.msk.f32.gmra.mrb[4].mxu1 %vm3693_vm5, %v239_v52  ;;  %2800 = vmatprep.mubr.f32.mxu0 %v339_v61 }
 0x126   :  { %483 = vmatprep.mubr.f32.mxu1 %v3673_v38  ;;  %3184 = vmatpush3.bf16.msra.mxu0 %v3726_v5 }
 0x127   :  { %3185 = vmatprep.subr.bf16.mxu0 %v3490_v0 }
 0x128   :  { %2801 = vmatmul.mubr.msk.f32.gmra.mrb[6].mxu0 %vm3704_vm6, %v341_v62 }
 0x129   :  { %484 = vmatmul.mubr.f32.gmra.mrb[6].mxu1 %v241_v54  ;;  %2846 = vmatprep.mubr.msk.f32.mxu0 %vm3491_vm7, %v3492_v1 }
 0x12a   :  { %2811 = vmatprep.mubr.msk.f32.mxu1 %vm3491_vm7, %v3492_v1  ;;  %3187 = vmatpush3.bf16.msra.mxu0 %v3732_v7 }
 0x12b   :  { %3188 = vmatprep.subr.bf16.mxu0 %v3490_v0 }
 0x12e   :  { %3190 = vmatpush3.bf16.msra.mxu0 %v3742_v10 }
 0x12f   :  { %3191 = vmatprep.subr.bf16.mxu0 %v3490_v0 }
 0x132   :  { %3193 = vmatpush3.bf16.msra.mxu0 %v3752_v13 }
 0x133   :  { %3194 = vmatprep.subr.bf16.mxu0 %v3490_v0 }
 0x136   :  { %3196 = vmatpush3.bf16.msra.mxu0 %v3762_v16 }
 0x137   :  { %3197 = vmatprep.subr.bf16.mxu0 %v3490_v0 }
 0x13a   :  { %3199 = vmatpush3.bf16.msra.mxu0 %v3772_v19 }
 0x13b   :  { %3200 = vmatprep.subr.bf16.mxu0 %v3490_v0 }
 0x13e   :  { %3202 = vmatpush3.bf16.msra.mxu0 %v3782_v22 }
 0x13f   :  { %3203 = vmatprep.subr.bf16.mxu0 %v3490_v0 }
 0x142   :  { %3205 = vmatpush3.bf16.msra.mxu0 %v3792_v25 }
 0x143   :  { %2908 = vmatprep.subr.mxu0 %v3492_v1 }
 0x1f0   :  { %v2521_v26 = vpop.f32.mrb[0].mxu1 }
 0x1f1   :  { %v2522_v27 = vpop.f32.mrb[1].mxu1 }
 0x1f2   :  { %v2523_v28 = vadd.f32 %v2522_v27, %v2521_v26 }
 0x1f4   :  { %v2524_v30 = vpop.f32.mrb[2].mxu1  ;;  %v471_v37 = vadd.f32 %v2523_v28, %v2403_v32 }
 0x1f5   :  { %v2525_v33 = vpop.f32.mrb[3].mxu1 }
 0x1f6   :  { %v2526_v34 = vadd.f32 %v2525_v33, %v2524_v30 }
 0x1f7   :  { %v2799_v35 = vpop.f32.mrb[4].mxu0 }
 0x1f8   :  { %v476_v39 = vadd.f32 %v2526_v34, %v2403_v32  ;;  %v2527_v41 = vpop.f32.mrb[4].mxu1  ;;  %v555_v42 = vpop.f32.mrb[5].mxu0 }
 0x1f9   :  { %v556_v43 = vadd.f32 %v555_v42, %v471_v37  ;;  %v2528_v44 = vpop.f32.mrb[5].mxu1 }
 0x1fa   :  { %v561_v45 = vadd.f32 %v2799_v35, %v476_v39  ;;  %v2529_v46 = vadd.f32 %v2528_v44, %v2527_v41 }
 0x1fb   :  { %v2802_v47 = vpop.f32.mrb[6].mxu0 }
 0x1fc   :  { %v3177_v48 = vpack.c.bf16 %v561_v45, %v556_v43  ;;  %v2530_v49 = vpop.f32.mrb[6].mxu1  ;;  %v481_v50 = vadd.f32 %v2529_v46, %v2403_v32  ;;  %v565_v51 = vpop.f32.mrb[7].mxu0 }
 0x1fd   :  { %v2531_v52 = vpop.f32.mrb[7].mxu1 }
 0x1fe   :  { %v566_v54 = vadd.f32 %v565_v51, %v481_v50  ;;  %v2532_v55 = vadd.f32 %v2531_v52, %v2530_v49  ;;  %3178 = vmatpush3.bf16.msra.mxu1 %v3177_v48  ;;  %v1317_v48 = vld [vmem:[#allocation5 + $0x80] sm:$0xff]  ;;  %v1318_v49 = vld [vmem:[#allocation5 + $0x88] sm:$0xff] }
 0x1ff   :  { %3179 = vmatprep.subr.bf16.mxu1 %v3490_v0  ;;  %v3236_v50 = vpack.c.bf16 %v1318_v49, %v1317_v48  ;;  %v1301_v51 = vld [vmem:[#allocation5] sm:$0xff]  ;;  %v1302_v52 = vld [vmem:[#allocation5 + $0x8] sm:$0xff] }
 0x200   :  { %v486_v56 = vadd.f32 %v2532_v55, %v2403_v32  ;;  %v1319_v55 = vld [vmem:[#allocation5 + $0x90] sm:$0xff]  ;;  %v1309_v48 = vld [vmem:[#allocation5 + $0x40] sm:$0xff]  ;;  %v1310_v49 = vld [vmem:[#allocation5 + $0x48] sm:$0xff] }
 0x202   :  { %v571_v57 = vadd.f32 %v2802_v47, %v486_v56  ;;  %v1320_v56 = vld [vmem:[#allocation5 + $0x98] sm:$0xff] }
 0x204   :  { %v3180_v58 = vpack.c.bf16 %v571_v57, %v566_v54 }
 0x206   :  { %3181 = vmatpush3.bf16.msra.mxu1 %v3180_v58  ;;  %v1303_v58 = vld [vmem:[#allocation5 + $0x10] sm:$0xff] }
 0x207   :  { %2849 = vmatprep.subr.mxu1 %v3492_v1 }
 0x209   :  { %2812 = vmatmul.mubr.msk.f32.vlgmr.msra.gmra.mrb[8].mxu1 %vm574_vm8, %v3804_v60 }
 0x20a   :  { %2851 = vmatprep.mubr.msk.f32.mxu1 %vm3491_vm7, %v3492_v1  ;;  %2850 = vmatpush3.msk.msra.mxu1 %vm722_vm9, %v3816_v2 }
 0x2dc   :  { %v644_v61 = vpop.f32.mrb[8].mxu1 }
 0x2dd   :  { %v2813_v62 = vpop.f32.mrb[9].mxu1  ;;  %2847 = vmatmul.mubr.f32.vlgmr.msra.gmra.mrb[8].mxu0 %v644_v61  ;;  %v1304_v61 = vld [vmem:[#allocation5 + $0x18] sm:$0xff] }
 0x2de   :  { %2910 = vmatprep.mubr.msk.f32.mxu0 %vm3491_vm7, %v3492_v1  ;;  %2909 = vmatpush3.msk.msra.mxu0 %vm722_vm9, %v3816_v2  ;;  %v3242_v62 = vpack.c.bf16 %v1304_v61, %v1303_v58  ;;  %v1311_v58 = vld [vmem:[#allocation5 + $0x50] sm:$0xff]  ;;  %v1312_v61 = vld [vmem:[#allocation5 + $0x58] sm:$0xff] }
 0x3b0   :  { %v714_v3 = vpop.f32.mrb[8].mxu0 }
 0x3b1   :  { %v2848_v4 = vpop.f32.mrb[9].mxu0  ;;  %2852 = vmatmul.mubr.msk.f32.vlgmr.msra.gmra.mrb[10].mxu1 %vm718_vm10, %v714_v3  ;;  %v1333_v3 = vld [vmem:[#allocation5 + $0x100] sm:$0xff] }
 0x3b2   :  { %2856 = vmatprep.mubr.msk.f32.mxu1 %vm796_vm11, %v3826_v6  ;;  %v1334_v4 = vld [vmem:[#allocation5 + $0x108] sm:$0xff] }
 0x484   :  { %v792_v8 = vpop.f32.mrb[10].mxu1 }
 0x485   :  { %v2853_v11 = vpop.f32.mrb[11].mxu1  ;;  %2854 = vmatprep.subr.msk.mxu1 %vm809_vm12, %v792_v8 }
 0x486   :  { %2855 = vmatpush3.msk.msra.mxu1 %vm809_vm12, %v792_v8  ;;  %v3268_v8 = vpack.c.bf16 %v1334_v4, %v1333_v3  ;;  %v1321_v11 = vld [vmem:[#allocation5 + $0xa0] sm:$0xff]  ;;  %v1342_v4 = vld [vmem:[#allocation5 + $0x148] sm:$0xff] }
 0x487   :  { %2857 = vmatmul.mubr.msk.f32.vlgmr.msra.gmra.mrb[12].mxu1 %vm796_vm11, %v3833_v9  ;;  %3206 = vmatprep.subr.bf16.mxu1 %v3490_v0  ;;  %v1341_v3 = vld [vmem:[#allocation5 + $0x140] sm:$0xff] }
 0x488   :  { %2859 = vmatprep.mubr.msk.f32.mxu1 %vm796_vm11, %v3839_v12 }
 0x48b   :  { %2860 = vmatmul.mubr.msk.f32.gmra.mrb[14].mxu1 %vm796_vm11, %v3850_v14 }
 0x48c   :  { %2870 = vmatprep.mubr.msk.f32.mxu1 %vm3491_vm7, %v3492_v1 }
 0x55a   :  { %v2858_v15 = vpop.f32.mrb[12].mxu1 }
 0x55b   :  { %v3856_v17 = vsub.f32 %v561_v45, %v2858_v15  ;;  %v879_v18 = vpop.f32.mrb[13].mxu1  ;;  %v2423_v45 = vld [vmem:[%s4098_s6] ss:$0 sm:$0xff]  ;;  %v1322_v15 = vld [vmem:[#allocation5 + $0xa8] sm:$0xff] }
 0x55c   :  { %v3858_v20 = vsub.f32 %v556_v43, %v879_v18  ;;  %v3244_v18 = vpack.c.bf16 %v1322_v15, %v1321_v11  ;;  %v1329_v11 = vld [vmem:[#allocation5 + $0xe0] sm:$0xff]  ;;  %v1330_v15 = vld [vmem:[#allocation5 + $0xe8] sm:$0xff] }
 0x55d   :  { %v903_v21 = vmul.f32 %v3856_v17, %v3856_v17 }
 0x55e   :  { %v902_v23 = vmul.f32 %v3858_v20, %v3858_v20  ;;  %v2861_v24 = vpop.f32.mrb[14].mxu1 }
 0x55f   :  { %v3864_v26 = vsub.f32 %v571_v57, %v2861_v24  ;;  %v889_v27 = vpop.f32.mrb[15].mxu1  ;;  %v3240_v57 = vpack.c.bf16 %v1320_v56, %v1319_v55  ;;  %v1327_v55 = vld [vmem:[#allocation5 + $0xd0] sm:$0xff]  ;;  %v1328_v56 = vld [vmem:[#allocation5 + $0xd8] sm:$0xff] }
 0x560   :  { %v3207_v28 = vpack.c.bf16 %v903_v21, %v902_v23  ;;  %v3866_v30 = vsub.f32 %v566_v54, %v889_v27  ;;  %v3238_v54 = vpack.c.bf16 %v1302_v52, %v1301_v51  ;;  %v1305_v21 = vld [vmem:[#allocation5 + $0x20] sm:$0xff]  ;;  %v1306_v23 = vld [vmem:[#allocation5 + $0x28] sm:$0xff]  ;;  %v1335_v27 = vld [vmem:[#allocation5 + $0x110] sm:$0xff] }
 0x561   :  { %v905_v32 = vmul.f32 %v3864_v26, %v3864_v26  ;;  %v3246_v24 = vpack.c.bf16 %v1306_v23, %v1305_v21  ;;  %v1339_v51 = vld [vmem:[#allocation5 + $0x130] sm:$0xff]  ;;  %v1340_v52 = vld [vmem:[#allocation5 + $0x138] sm:$0xff]  ;;  %v1313_v21 = vld [vmem:[#allocation5 + $0x60] sm:$0xff] }
 0x562   :  { %v904_v33 = vmul.f32 %v3866_v30, %v3866_v30  ;;  %3208 = vmatpush3.bf16.msra.mxu1 %v3207_v28  ;;  %v1336_v28 = vld [vmem:[#allocation5 + $0x118] sm:$0xff]  ;;  %v1314_v23 = vld [vmem:[#allocation5 + $0x68] sm:$0xff] }
 0x563   :  { %3209 = vmatprep.subr.bf16.mxu1 %v3490_v0 }
 0x564   :  { %v3210_v34 = vpack.c.bf16 %v905_v32, %v904_v33  ;;  %v3272_v32 = vpack.c.bf16 %v1336_v28, %v1335_v27  ;;  %v1323_v33 = vld [vmem:[#allocation5 + $0xb0] sm:$0xff]  ;;  %v1344_v28 = vld [vmem:[#allocation5 + $0x158] sm:$0xff] }
 0x565   :  { %v1343_v27 = vld [vmem:[#allocation5 + $0x150] sm:$0xff] }
 0x566   :  { %3211 = vmatpush3.bf16.msra.mxu1 %v3210_v34  ;;  %v1324_v34 = vld [vmem:[#allocation5 + $0xb8] sm:$0xff] }
 0x567   :  { %3212 = vmatprep.subr.bf16.mxu1 %v3490_v0 }
 0x569   :  { %2871 = vmatmul.mubr.msk.f32.vlgmr.msra.gmra.mrb[16].mxu1 %vm574_vm8, %v3804_v60 }
 0x56a   :  { %3214 = vmatpush3.bf16.msra.mxu1 %v3726_v5  ;;  %2905 = vmatprep.mubr.msk.f32.mxu1 %vm3491_vm7, %v3492_v1 }
 0x56b   :  { %3215 = vmatprep.subr.bf16.mxu1 %v3490_v0 }
 0x56e   :  { %3217 = vmatpush3.bf16.msra.mxu1 %v3732_v7 }
 0x56f   :  { %3218 = vmatprep.subr.bf16.mxu1 %v3490_v0 }
 0x572   :  { %3220 = vmatpush3.bf16.msra.mxu1 %v3742_v10 }
 0x573   :  { %3221 = vmatprep.subr.bf16.mxu1 %v3490_v0 }
 0x576   :  { %3223 = vmatpush3.bf16.msra.mxu1 %v3752_v13 }
 0x577   :  { %3224 = vmatprep.subr.bf16.mxu1 %v3490_v0 }
 0x57a   :  { %3226 = vmatpush3.bf16.msra.mxu1 %v3762_v16 }
 0x57b   :  { %3227 = vmatprep.subr.bf16.mxu1 %v3490_v0 }
 0x57e   :  { %3229 = vmatpush3.bf16.msra.mxu1 %v3772_v19 }
 0x57f   :  { %3230 = vmatprep.subr.bf16.mxu1 %v3490_v0 }
 0x582   :  { %3232 = vmatpush3.bf16.msra.mxu1 %v3782_v22 }
 0x583   :  { %3233 = vmatprep.subr.bf16.mxu1 %v3490_v0 }
 0x586   :  { %3235 = vmatpush3.bf16.msra.mxu1 %v3792_v25 }
 0x587   :  { %3269 = vmatprep.subr.bf16.mxu1 %v3268_v8 }
 0x63c   :  { %v972_v35 = vpop.f32.mrb[16].mxu1 }
 0x63d   :  { %v2872_v37 = vpop.f32.mrb[17].mxu1  ;;  %2906 = vmatmul.mubr.f32.vlgmr.msra.gmra.mrb[18].mxu1 %v972_v35  ;;  %v3248_v35 = vpack.c.bf16 %v1324_v34, %v1323_v33  ;;  %v1331_v33 = vld [vmem:[#allocation5 + $0xf0] sm:$0xff]  ;;  %v1332_v34 = vld [vmem:[#allocation5 + $0xf8] sm:$0xff] }
 0x63e   :  { %3271 = vmatpush3.bf16.msra.mxu1 %v3268_v8  ;;  %v1307_v37 = vld [vmem:[#allocation5 + $0x30] sm:$0xff]  ;;  %v3284_v8 = vpack.c.bf16 %v1342_v4, %v1341_v3 }
 0x63f   :  { %3273 = vmatprep.subr.bf16.mxu1 %v3272_v32 }
 0x642   :  { %3275 = vmatpush3.bf16.msra.mxu1 %v3272_v32  ;;  %v3288_v32 = vpack.c.bf16 %v1344_v28, %v1343_v27 }
 0x710   :  { %v1042_v39 = vpop.f32.mrb[18].mxu1 }
 0x711   :  { %v2907_v41 = vpop.f32.mrb[19].mxu1  ;;  %2911 = vmatmul.mubr.msk.f32.vlgmr.msra.gmra.mrb[10].mxu0 %vm718_vm10, %v1042_v39  ;;  %v1308_v39 = vld [vmem:[#allocation5 + $0x38] sm:$0xff] }
 0x712   :  { %2915 = vmatprep.mubr.msk.f32.mxu0 %vm796_vm11, %v3826_v6  ;;  %v3250_v41 = vpack.c.bf16 %v1308_v39, %v1307_v37  ;;  %v1315_v37 = vld [vmem:[#allocation5 + $0x70] sm:$0xff]  ;;  %v1316_v39 = vld [vmem:[#allocation5 + $0x78] sm:$0xff] }
 0x7e4   :  { %v1115_v42 = vpop.f32.mrb[10].mxu0 }
 0x7e5   :  { %v1116_v43 = vadd.f32 1e-05, %v1115_v42  ;;  %v2912_v44 = vpop.f32.mrb[11].mxu0  ;;  %v1337_v42 = vld [vmem:[#allocation5 + $0x120] sm:$0xff] }
 0x7e7   :  { %3374 = vrsqrt.f32 %v1116_v43  ;;  %v1338_v43 = vld [vmem:[#allocation5 + $0x128] sm:$0xff] }
 0x7e8   :  { %v3276_v44 = vpack.c.bf16 %v1338_v43, %v1337_v42  ;;  %v1345_v42 = vld [vmem:[#allocation5 + $0x160] sm:$0xff]  ;;  %v1346_v43 = vld [vmem:[#allocation5 + $0x168] sm:$0xff] }
 0x7ea   :  { %3277 = vmatprep.subr.bf16.mxu1 %v3276_v44 }
 0x7eb   :  { %3279 = vmatpush3.bf16.msra.mxu1 %v3276_v44  ;;  %v3292_v44 = vpack.c.bf16 %v1346_v43, %v1345_v42 }
 0x7f1   :  { %v3375_v46 = vpop.eup %3374 }
 0x7f2   :  { %v1126_v47 = vmul.f32 %v3375_v46, %v2423_v45  ;;  %v1325_v45 = vld [vmem:[#allocation5 + $0xc0] sm:$0xff]  ;;  %v1326_v46 = vld [vmem:[#allocation5 + $0xc8] sm:$0xff] }
 0x7f4   :  { %2913 = vmatprep.subr.msk.mxu0 %vm809_vm12, %v1126_v47 }
 0x7f5   :  { %2914 = vmatpush3.msk.msra.mxu0 %vm809_vm12, %v1126_v47  ;;  %v3252_v47 = vpack.c.bf16 %v1326_v46, %v1325_v45  ;;  %v1347_v45 = vld [vmem:[#allocation5 + $0x170] sm:$0xff]  ;;  %v1348_v46 = vld [vmem:[#allocation5 + $0x178] sm:$0xff] }
 0x7f6   :  { %2916 = vmatmul.mubr.msk.f32.vlgmr.msra.gmra.mrb[12].mxu0 %vm796_vm11, %v3833_v9  ;;  %3237 = vmatprep.subr.bf16.mxu0 %v3236_v50  ;;  %v3254_v50 = vpack.c.bf16 %v1310_v49, %v1309_v48  ;;  %v2429_v48 = vld [vmem:[%s4099_s7] ss:$0 sm:$0xff] }
 0x7f7   :  { %2918 = vmatprep.mubr.msk.f32.mxu0 %vm796_vm11, %v3839_v12  ;;  %3239 = vmatpush3.bf16.msra.mxu0 %v3238_v54  ;;  %v3280_v54 = vpack.c.bf16 %v1340_v52, %v1339_v51 }
 0x7f8   :  { %3241 = vmatprep.subr.bf16.mxu0 %v3240_v57  ;;  %v3256_v57 = vpack.c.bf16 %v1328_v56, %v1327_v55 }
 0x7f9   :  { %3281 = vmatprep.subr.bf16.mxu1 %v3280_v54 }
 0x7fa   :  { %2919 = vmatmul.mubr.msk.f32.gmra.mrb[14].mxu0 %vm796_vm11, %v3850_v14  ;;  %3283 = vmatpush3.bf16.msra.mxu1 %v3280_v54 }
 0x7fb   :  { %3243 = vmatpush3.bf16.msra.mxu0 %v3242_v62  ;;  %v3258_v62 = vpack.c.bf16 %v1312_v61, %v1311_v58  ;;  %3285 = vmatprep.subr.bf16.mxu1 %v3284_v8 }
 0x7fc   :  { %3245 = vmatprep.subr.bf16.mxu0 %v3244_v18  ;;  %v3260_v18 = vpack.c.bf16 %v1330_v15, %v1329_v11 }
 0x7fe   :  { %3287 = vmatpush3.bf16.msra.mxu1 %v3284_v8 }
 0x7ff   :  { %3247 = vmatpush3.bf16.msra.mxu0 %v3246_v24  ;;  %v3262_v24 = vpack.c.bf16 %v1314_v23, %v1313_v21  ;;  %3289 = vmatprep.subr.bf16.mxu1 %v3288_v32 }
 0x800   :  { %3249 = vmatprep.subr.bf16.mxu0 %v3248_v35  ;;  %v3264_v35 = vpack.c.bf16 %v1332_v34, %v1331_v33 }
 0x802   :  { %3291 = vmatpush3.bf16.msra.mxu1 %v3288_v32 }
 0x803   :  { %3251 = vmatpush3.bf16.msra.mxu0 %v3250_v41  ;;  %v3266_v41 = vpack.c.bf16 %v1316_v39, %v1315_v37  ;;  %3293 = vmatprep.subr.bf16.mxu1 %v3292_v44 }
 0x804   :  { %3253 = vmatprep.subr.bf16.mxu0 %v3252_v47  ;;  %v3296_v47 = vpack.c.bf16 %v1348_v46, %v1347_v45 }
 0x806   :  { %3295 = vmatpush3.bf16.msra.mxu1 %v3292_v44 }
 0x807   :  { %3255 = vmatpush3.bf16.msra.mxu0 %v3254_v50  ;;  %3297 = vmatprep.subr.bf16.mxu1 %v3296_v47 }
 0x808   :  { %3257 = vmatprep.subr.bf16.mxu0 %v3256_v57 }
 0x80a   :  { %3299 = vmatpush3.bf16.msra.mxu1 %v3296_v47 }
 0x80b   :  { %3259 = vmatpush3.bf16.msra.mxu0 %v3258_v62  ;;  %3306 = vmatprep.subr.bf16.mxu1 %v3490_v0 }
 0x80c   :  { %3261 = vmatprep.subr.bf16.mxu0 %v3260_v18 }
 0x80f   :  { %3263 = vmatpush3.bf16.msra.mxu0 %v3262_v24 }
 0x810   :  { %3265 = vmatprep.subr.bf16.mxu0 %v3264_v35 }
 0x813   :  { %3267 = vmatpush3.bf16.msra.mxu0 %v3266_v41 }
 0x814   :  { %3300 = vmatprep.subr.bf16.mxu0 %v3490_v0 }
 0x8c9   :  { %v2917_v49 = vpop.f32.mrb[12].mxu0 }
 0x8ca   :  { %v1216_v50 = vmul.f32 %v2917_v49, %v3856_v17  ;;  %v1196_v51 = vpop.f32.mrb[13].mxu0 }
 0x8cb   :  { %v1215_v52 = vmul.f32 %v1196_v51, %v3858_v20 }
 0x8cc   :  { %v1226_v54 = vadd.f32 %v2429_v48, %v1216_v50 }
 0x8cd   :  { %v1225_v55 = vadd.f32 %v2429_v48, %v1215_v52  ;;  %v2920_v56 = vpop.f32.mrb[14].mxu0 }
 0x8ce   :  { %v2431_v57 = vmul.f32 -1.442695, %v1226_v54  ;;  %v1218_v58 = vmul.f32 %v2920_v56, %v3864_v26  ;;  %v1206_v61 = vpop.f32.mrb[15].mxu0 }
 0x8cf   :  { %v2430_v62 = vmul.f32 -1.442695, %v1225_v55  ;;  %v1217_v3 = vmul.f32 %v1206_v61, %v3866_v30 }
 0x8d0   :  { %3376 = vpow2.f32 %v2431_v57  ;;  %v1228_v4 = vadd.f32 %v2429_v48, %v1218_v58 }
 0x8d1   :  { %3378 = vpow2.f32 %v2430_v62  ;;  %v1227_v8 = vadd.f32 %v2429_v48, %v1217_v3  ;;  %v2434_v62 = vld [vmem:[%s4101_s9] ss:$0 sm:$0xff] }
 0x8d2   :  { %v2433_v11 = vmul.f32 -1.442695, %v1228_v4 }
 0x8d3   :  { %v2432_v15 = vmul.f32 -1.442695, %v1227_v8 }
 0x8d4   :  { %3380 = vpow2.f32 %v2433_v11 }
 0x8d5   :  { %3382 = vpow2.f32 %v2432_v15 }
 0x8da   :  { %v3377_v17 = vpop.eup %3376 }
 0x8db   :  { %v3379_v20 = vpop.eup %3378  ;;  %v1242_v18 = vadd.f32 1.0, %v3377_v17 }
 0x8dc   :  { %v1241_v21 = vadd.f32 1.0, %v3379_v20 }
 0x8dd   :  { %3384 = vrcp.f32 %v1242_v18 }
 0x8de   :  { %v3381_v23 = vpop.eup %3380  ;;  %3386 = vrcp.f32 %v1241_v21 }
 0x8df   :  { %v3383_v26 = vpop.eup %3382  ;;  %v1244_v24 = vadd.f32 1.0, %v3381_v23 }
 0x8e0   :  { %v1243_v27 = vadd.f32 1.0, %v3383_v26 }
 0x8e1   :  { %3388 = vrcp.f32 %v1244_v24 }
 0x8e2   :  { %3390 = vrcp.f32 %v1243_v27 }
 0x8e7   :  { %v3385_v30 = vpop.eup %3384 }
 0x8e8   :  { %v3387_v28 = vpop.eup %3386  ;;  %v1254_v32 = vmul.f32 %v3385_v30, %v1226_v54 }
 0x8e9   :  { %v1253_v33 = vmul.f32 %v3387_v28, %v1225_v55 }
 0x8ea   :  { %v1265_v34 = vrot.slane %v1254_v32, 7 }
 0x8eb   :  { %v3389_v35 = vpop.eup %3388  ;;  %v1264_v37 = vrot.slane %v1253_v33, 7  ;;  %1419 = vmatprep.mubr.f32.mxu0 %v1253_v33 }
 0x8ec   :  { %v3391_v39 = vpop.eup %3390  ;;  %v1256_v41 = vmul.f32 %v3389_v35, %v1228_v4 }
 0x8ed   :  { %v1276_v42 = vsel %vm234_vm1, 0.0, %v1264_v37  ;;  %v1266_v43 = vsel %vm234_vm1, %v1264_v37, %v1265_v34  ;;  %v1255_v44 = vmul.f32 %v3391_v39, %v1227_v8 }
 0x8ee   :  { %v1269_v45 = vrot.slane %v1256_v41, 7  ;;  %2436 = vmatmul.mubr.msk.f32.vlgmr.msra.gmra.mrb[16].mxu0 %vm3669_vm2, %v1276_v42  ;;  %v1284_v46 = vrot.slane %v1276_v42, 2  ;;  %v1285_v47 = vrot.slane %v1266_v43, 2 }
 0x8ef   :  { %1424 = vmatprep.mubr.f32.mxu0 %v1254_v32  ;;  %v1267_v48 = vrot.slane %v1255_v44, 7 }
 0x8f0   :  { %v1286_v49 = vsel %vm332_vm3, %v1284_v46, %v1285_v47  ;;  %v1277_v50 = vsel %vm234_vm1, %v1269_v45, 0.0 }
 0x8f1   :  { %2953 = vmatprep.mubr.f32.mxu1 %v1286_v49  ;;  %v1268_v51 = vsel %vm234_vm1, %v1265_v34, %v1267_v48  ;;  %v1270_v52 = vsel %vm234_vm1, %v1267_v48, %v1269_v45  ;;  %v1291_v54 = vrot.slane %v1277_v50, 2 }
 0x8f2   :  { %1425 = vmatmul.mubr.f32.gmra.mrb[18].mxu0 %v1266_v43  ;;  %v1287_v55 = vrot.slane %v1268_v51, 2  ;;  %v1289_v56 = vrot.slane %v1270_v52, 2 }
 0x8f3   :  { %1429 = vmatprep.mubr.f32.mxu0 %v1255_v44 }
 0x8f4   :  { %v1288_v36 = vsel %vm332_vm3, %v1285_v47, %v1287_v55  ;;  %v1290_v57 = vsel %vm332_vm3, %v1287_v55, %v1289_v56  ;;  %v1292_v58 = vsel %vm332_vm3, %v1289_v56, %v1291_v54 }
 0x8f5   :  { %2954 = vmatmul.mubr.msk.f32.vlgmr.msra.gmra.mrb[20].mxu1 %vm3687_vm4, %v1288_v36 }
 0x8f6   :  { %2438 = vmatmul.mubr.msk.f32.gmra.mrb[20].mxu0 %vm3693_vm5, %v1268_v51  ;;  %2956 = vmatprep.mubr.f32.mxu1 %v1290_v57 }
 0x8f7   :  { %1434 = vmatprep.mubr.f32.mxu0 %v1256_v41  ;;  %3308 = vmatpush3.bf16.msra.mxu1 %v3726_v5 }
 0x8f8   :  { %3309 = vmatprep.subr.bf16.mxu1 %v3490_v0 }
 0x8f9   :  { %2957 = vmatmul.mubr.msk.f32.gmra.mrb[22].mxu1 %vm3704_vm6, %v1292_v58 }
 0x8fa   :  { %1435 = vmatmul.mubr.f32.gmra.mrb[22].mxu0 %v1270_v52  ;;  %3002 = vmatprep.mubr.msk.f32.mxu1 %vm3491_vm7, %v3492_v1 }
 0x8fb   :  { %2967 = vmatprep.mubr.msk.f32.mxu0 %vm3491_vm7, %v3492_v1  ;;  %3311 = vmatpush3.bf16.msra.mxu1 %v3732_v7 }
 0x8fc   :  { %3312 = vmatprep.subr.bf16.mxu1 %v3490_v0 }
 0x8ff   :  { %3314 = vmatpush3.bf16.msra.mxu1 %v3742_v10 }
 0x900   :  { %3315 = vmatprep.subr.bf16.mxu1 %v3490_v0 }
 0x903   :  { %3317 = vmatpush3.bf16.msra.mxu1 %v3752_v13 }
 0x904   :  { %3318 = vmatprep.subr.bf16.mxu1 %v3490_v0 }
 0x907   :  { %3320 = vmatpush3.bf16.msra.mxu1 %v3762_v16 }
 0x908   :  { %3321 = vmatprep.subr.bf16.mxu1 %v3490_v0 }
 0x90b   :  { %3323 = vmatpush3.bf16.msra.mxu1 %v3772_v19 }
 0x90c   :  { %3324 = vmatprep.subr.bf16.mxu1 %v3490_v0 }
 0x90f   :  { %3326 = vmatpush3.bf16.msra.mxu1 %v3782_v22 }
 0x910   :  { %3327 = vmatprep.subr.bf16.mxu1 %v3490_v0 }
 0x913   :  { %3329 = vmatpush3.bf16.msra.mxu1 %v3792_v25 }
 0x914   :  { %3064 = vmatprep.subr.mxu1 %v3492_v1 }
 0x9c1   :  { %v2643_v53 = vpop.f32.mrb[16].mxu0 }
 0x9c2   :  { %v2644_v59 = vpop.f32.mrb[17].mxu0 }
 0x9c3   :  { %v2645_v63 = vadd.f32 %v2644_v59, %v2643_v53 }
 0x9c5   :  { %v2646_v61 = vpop.f32.mrb[18].mxu0  ;;  %v1422_v11 = vadd.f32 %v2645_v63, %v2434_v62  ;;  %v2189_v63 = vld [vmem:[%s4108_s16 + $0x8] sm:$0xff] }
 0x9c6   :  { %v2647_v3 = vpop.f32.mrb[19].mxu0 }
 0x9c7   :  { %v2648_v4 = vadd.f32 %v2647_v3, %v2646_v61 }
 0x9c8   :  { %v2955_v8 = vpop.f32.mrb[20].mxu1 }
 0x9c9   :  { %v1427_v15 = vadd.f32 %v2648_v4, %v2434_v62  ;;  %v2649_v17 = vpop.f32.mrb[20].mxu0  ;;  %v1506_v20 = vpop.f32.mrb[21].mxu1  ;;  %v2190_v4 = vld [vmem:[%s4108_s16 + $0x10] sm:$0xff] }
 0x9ca   :  { %v1507_v18 = vadd.f32 %v1506_v20, %v1422_v11  ;;  %v2650_v21 = vpop.f32.mrb[21].mxu0 }
 0x9cb   :  { %v1512_v23 = vadd.f32 %v2955_v8, %v1427_v15  ;;  %v2651_v26 = vadd.f32 %v2650_v21, %v2649_v17  ;;  %v2191_v8 = vld [vmem:[%s4108_s16 + $0x18] sm:$0xff]  ;;  %v2187_v15 = vld [vmem:[%s4126_s14] sm:$0x3] }
 0x9cc   :  { %v2958_v24 = vpop.f32.mrb[22].mxu1  ;;  %v3364_v11 = vpack.c.bf16 %v2191_v8, %v2190_v4  ;;  %v2465_v21 = vld [vmem:[%s4109_s17] ss:$0 sm:$0xff] }
 0x9cd   :  { %v3301_v27 = vpack.c.bf16 %v1512_v23, %v1507_v18  ;;  %v2652_v30 = vpop.f32.mrb[22].mxu0  ;;  %v1432_v28 = vadd.f32 %v2651_v26, %v2434_v62  ;;  %v1516_v32 = vpop.f32.mrb[23].mxu1 }
 0x9ce   :  { %v2653_v33 = vpop.f32.mrb[23].mxu0 }
 0x9cf   :  { %v1517_v34 = vadd.f32 %v1516_v32, %v1432_v28  ;;  %v2654_v35 = vadd.f32 %v2653_v33, %v2652_v30  ;;  %3302 = vmatpush3.bf16.msra.mxu0 %v3301_v27 }
 0x9d0   :  { %3303 = vmatprep.subr.bf16.mxu0 %v3490_v0 }
 0x9d1   :  { %v1437_v37 = vadd.f32 %v2654_v35, %v2434_v62 }
 0x9d3   :  { %v1522_v39 = vadd.f32 %v2958_v24, %v1437_v37 }
 0x9d5   :  { %v3304_v41 = vpack.c.bf16 %v1522_v39, %v1517_v34 }
 0x9d7   :  { %3305 = vmatpush3.bf16.msra.mxu0 %v3304_v41 }
 0x9d8   :  { %3005 = vmatprep.subr.mxu0 %v3492_v1 }
 0x9da   :  { %2968 = vmatmul.mubr.msk.f32.vlgmr.msra.gmra.mrb[24].mxu0 %vm574_vm8, %v3804_v60 }
 0x9db   :  { %3006 = vmatpush3.msk.msra.mxu0 %vm722_vm9, %v3816_v2  ;;  %3007 = vmatprep.mubr.msk.f32.mxu0 %vm3491_vm7, %v3492_v1 }
 0xaad   :  { %v1591_v42 = vpop.f32.mrb[24].mxu0 }
 0xaae   :  { %3003 = vmatmul.mubr.f32.vlgmr.msra.gmra.mrb[24].mxu1 %v1591_v42  ;;  %v2969_v43 = vpop.f32.mrb[25].mxu0 }
 0xaaf   :  { %3065 = vmatpush3.msk.msra.mxu1 %vm722_vm9, %v3816_v2  ;;  %3066 = vmatprep.mubr.msk.f32.mxu1 %vm3491_vm7, %v3492_v1 }
 0xb81   :  { %v1661_v44 = vpop.f32.mrb[24].mxu1 }
 0xb82   :  { %3008 = vmatmul.mubr.msk.f32.vlgmr.msra.gmra.mrb[26].mxu0 %vm718_vm10, %v1661_v44  ;;  %v3004_v45 = vpop.f32.mrb[25].mxu1 }
 0xb83   :  { %3012 = vmatprep.mubr.msk.f32.mxu0 %vm796_vm11, %v3826_v6 }
 0xc55   :  { %v1734_v46 = vpop.f32.mrb[26].mxu0 }
 0xc56   :  { %3010 = vmatprep.subr.msk.mxu0 %vm809_vm12, %v1734_v46  ;;  %v3009_v47 = vpop.f32.mrb[27].mxu0 }
 0xc57   :  { %3011 = vmatpush3.msk.msra.mxu0 %vm809_vm12, %v1734_v46 }
 0xc58   :  { %3013 = vmatmul.mubr.msk.f32.vlgmr.msra.gmra.mrb[28].mxu0 %vm796_vm11, %v3833_v9  ;;  %3330 = vmatprep.subr.bf16.mxu0 %v3490_v0 }
 0xc59   :  { %3015 = vmatprep.mubr.msk.f32.mxu0 %vm796_vm11, %v3839_v12 }
 0xc5c   :  { %3016 = vmatmul.mubr.msk.f32.gmra.mrb[30].mxu0 %vm796_vm11, %v3850_v14 }
 0xc5d   :  { %3026 = vmatprep.mubr.msk.f32.mxu0 %vm3491_vm7, %v3492_v1 }
 0xd2b   :  { %v3014_v2 = vpop.f32.mrb[28].mxu0 }
 0xd2c   :  { %v3982_v48 = vsub.f32 %v1512_v23, %v3014_v2  ;;  %v1807_v49 = vpop.f32.mrb[29].mxu0 }
 0xd2d   :  { %v3984_v50 = vsub.f32 %v1507_v18, %v1807_v49 }
 0xd2e   :  { %v1831_v51 = vmul.f32 %v3982_v48, %v3982_v48 }
 0xd2f   :  { %v1830_v52 = vmul.f32 %v3984_v50, %v3984_v50  ;;  %v3017_v54 = vpop.f32.mrb[30].mxu0 }
 0xd30   :  { %v3990_v55 = vsub.f32 %v1522_v39, %v3017_v54  ;;  %v1817_v56 = vpop.f32.mrb[31].mxu0 }
 0xd31   :  { %v3331_v36 = vpack.c.bf16 %v1831_v51, %v1830_v52  ;;  %v3992_v57 = vsub.f32 %v1517_v34, %v1817_v56  ;;  %v2460_v34 = vld [vmem:[%s4103_s11] ss:$0 sm:$0xff]  ;;  %s3493_s11 = smov [#allocation7]  }
 0xd32   :  { %v1833_v58 = vmul.f32 %v3990_v55, %v3990_v55  ;;  %s2385_s30 = sshll.u32 %s3493_s11, 4  ;;  %s2386_s30 = int_to_ptr.vmem [resolvable:$true] %s2385_s30 }
 0xd33   :  { %v1832_v53 = vmul.f32 %v3992_v57, %v3992_v57  ;;  %3332 = vmatpush3.bf16.msra.mxu0 %v3331_v36  ;;  %s3458_s0 = scalar_lea.vmem %s2386_s30, 512  ;;  %p3463_p3 = scmp.lt.s32.totalorder %s2386_s30, %s2386_s30 }
 0xd34   :  { %3333 = vmatprep.subr.bf16.mxu0 %v3490_v0  ;;  %p3459_p2 = scmp.ne.s32.totalorder %s2386_s30, %s3458_s0  ;;  %p3464_p4 = scmp.lt.s32.totalorder %s3458_s0, %s3458_s0 }
 0xd35   :  { %v3334_v59 = vpack.c.bf16 %v1833_v58, %v1832_v53 }
 0xd36   :  { %p3465_p5 = por %p3464_p4, %p3463_p3 }
 0xd37   :  { %3335 = vmatpush3.bf16.msra.mxu0 %v3334_v59 }
 0xd38   :  { %3336 = vmatprep.subr.bf16.mxu0 %v3490_v0  ;;  %p3466_p6 = pnand %p3465_p5, %p3459_p2 }
 0xd3a   :  { %3027 = vmatmul.mubr.msk.f32.vlgmr.msra.gmra.mrb[32].mxu0 %vm574_vm8, %v3804_v60 }
 0xd3b   :  { %3338 = vmatpush3.bf16.msra.mxu0 %v3726_v5  ;;  %3061 = vmatprep.mubr.msk.f32.mxu0 %vm3491_vm7, %v3492_v1 }
 0xd3c   :  { %3339 = vmatprep.subr.bf16.mxu0 %v3490_v0 }
 0xd3f   :  { %3341 = vmatpush3.bf16.msra.mxu0 %v3732_v7 }
 0xd40   :  { %3342 = vmatprep.subr.bf16.mxu0 %v3490_v0 }
 0xd43   :  { %3344 = vmatpush3.bf16.msra.mxu0 %v3742_v10 }
 0xd44   :  { %3345 = vmatprep.subr.bf16.mxu0 %v3490_v0 }
 0xd47   :  { %3347 = vmatpush3.bf16.msra.mxu0 %v3752_v13 }
 0xd48   :  { %3348 = vmatprep.subr.bf16.mxu0 %v3490_v0 }
 0xd4b   :  { %3350 = vmatpush3.bf16.msra.mxu0 %v3762_v16 }
 0xd4c   :  { %3351 = vmatprep.subr.bf16.mxu0 %v3490_v0 }
 0xd4f   :  { %3353 = vmatpush3.bf16.msra.mxu0 %v3772_v19 }
 0xd50   :  { %3354 = vmatprep.subr.bf16.mxu0 %v3490_v0 }
 0xd53   :  { %3356 = vmatpush3.bf16.msra.mxu0 %v3782_v22  ;;  %v2454_v22 = vld [vmem:[%s4102_s10] ss:$0 sm:$0xff] }
 0xd54   :  { %3357 = vmatprep.subr.bf16.mxu0 %v3490_v0 }
 0xd57   :  { %3359 = vmatpush3.bf16.msra.mxu0 %v3792_v25  ;;  %v2188_v25 = vld [vmem:[%s4108_s16] sm:$0xff] }
 0xd58   :  { %v3361_v3 = vpack.c.bf16 %v2189_v63, %v2188_v25 }
 0xe0d   :  { %v1900_v5 = vpop.f32.mrb[32].mxu0 }
 0xe0e   :  { %3062 = vmatmul.mubr.f32.vlgmr.msra.gmra.mrb[34].mxu0 %v1900_v5  ;;  %v3028_v7 = vpop.f32.mrb[33].mxu0 }
 0xee1   :  { %v1970_v10 = vpop.f32.mrb[34].mxu0 }
 0xee2   :  { %3067 = vmatmul.mubr.msk.f32.vlgmr.msra.gmra.mrb[26].mxu1 %vm718_vm10, %v1970_v10  ;;  %v3063_v13 = vpop.f32.mrb[35].mxu0 }
 0xee3   :  { %3071 = vmatprep.mubr.msk.f32.mxu1 %vm796_vm11, %v3826_v6 }
 0xfb5   :  { %v2043_v16 = vpop.f32.mrb[26].mxu1 }
 0xfb6   :  { %v2044_v19 = vadd.f32 1e-05, %v2043_v16  ;;  %v3068_v60 = vpop.f32.mrb[27].mxu1 }
 0xfb8   :  { %3392 = vrsqrt.f32 %v2044_v19 }
 0xfc2   :  { %v3393_v61 = vpop.eup %3392 }
 0xfc3   :  { %v2054_v62 = vmul.f32 %v3393_v61, %v2454_v22 }
 0xfc5   :  { %3069 = vmatprep.subr.msk.mxu1 %vm809_vm12, %v2054_v62 }
 0xfc6   :  { %3070 = vmatpush3.msk.msra.mxu1 %vm809_vm12, %v2054_v62 }
 0xfc7   :  { %3072 = vmatmul.mubr.msk.f32.vlgmr.msra.gmra.mrb[28].mxu1 %vm796_vm11, %v3833_v9  ;;  %3360 = vmatprep.subr.bf16.mxu1 %v3490_v0 }
 0xfc8   :  { %3362 = vmatpush3.bf16.msra.mxu1 %v3361_v3  ;;  %3074 = vmatprep.mubr.msk.f32.mxu1 %vm796_vm11, %v3839_v12 }
 0xfc9   :  { %3363 = vmatprep.subr.bf16.mxu1 %v3490_v0 }
 0xfcb   :  { %3075 = vmatmul.mubr.msk.f32.gmra.mrb[30].mxu1 %vm796_vm11, %v3850_v14 }
 0xfcc   :  { %3365 = vmatpush3.bf16.msra.mxu1 %v3364_v11  ;;  %3085 = vmatprep.mubr.msk.f32.mxu1 %vm3491_vm7, %v3492_v1 }
 0xfcf   :  { %3086 = vmatmul.mubr.msk.f32.vlgmr.msra.gmra.mrb[32].mxu1 %vm574_vm8, %v2187_v15 }
 0xfd0   :  { %3090 = vmatprep.mubr.msk.f32.mxu1 %vm796_vm11, %v3826_v6 }
0x109a   :  { %v3073_v17 = vpop.f32.mrb[28].mxu1 }
0x109b   :  { %v2124_v20 = vpop.f32.mrb[29].mxu1  ;;  %v2144_v6 = vmul.f32 %v3073_v17, %v3982_v48 }
0x109c   :  { %v2143_v35 = vmul.f32 %v2124_v20, %v3984_v50 }
0x109d   :  { %v2154_v37 = vadd.f32 %v2460_v34, %v2144_v6 }
0x109e   :  { %v3076_v18 = vpop.f32.mrb[30].mxu1  ;;  %v2153_v41 = vadd.f32 %v2460_v34, %v2143_v35 }
0x109f   :  { %v2134_v0 = vpop.f32.mrb[31].mxu1  ;;  %v2146_v39 = vmul.f32 %v3076_v18, %v3990_v55  ;;  %v2462_v42 = vmul.f32 -1.442695, %v2154_v37 }
0x10a1   :  { %v2156_v43 = vadd.f32 %v2460_v34, %v2146_v39 }
0x10a2   :  { %v2268_v23 = vpop.f32.mrb[32].mxu1 }
0x10a3   :  { %v2269_v26 = vadd.f32 %v2465_v21, %v2268_v23  ;;  %v3087_v1 = vpop.f32.mrb[33].mxu1 }
0x10a5   :  { %v2467_v24 = vmul.f32 -1.442695, %v2269_v26 }
0x10a7   :  { %3394 = vpow2.f32 %v2467_v24 }
0x10b1   :  { %v3395_v27 = vpop.eup %3394 }
0x10b2   :  { %v2275_v30 = vadd.f32 1.0, %v3395_v27 }
0x10b4   :  { %3396 = vrcp.f32 %v2275_v30 }
0x10b5   :  { %3398 = vpow2.f32 %v2462_v42 }
0x10be   :  { %v3397_v28 = vpop.eup %3396 }
0x10bf   :  { %v2278_v32 = vmul.f32 %v3397_v28, %v2269_v26  ;;  %v3399_v46 = vpop.eup %3398 }
0x10c0   :  { %v2170_v2 = vadd.f32 1.0, %v3399_v46 }
0x10c1   :  { %v2279_v33 = vadd.f32 1.0, %v2278_v32 }
0x10c3   :  { %3088 = vmatprep.subr.msk.mxu1 %vm809_vm12, %v2279_v33 }
0x10c4   :  { %3089 = vmatpush3.msk.msra.mxu1 %vm809_vm12, %v2279_v33 }
0x10c5   :  { %3091 = vmatmul.mubr.msk.f32.vlgmr.msra.gmra.mrb[34].mxu1 %vm796_vm11, %v3833_v9  ;;  %v2145_v9 = vmul.f32 %v2134_v0, %v3992_v57 }
0x10c6   :  { %3093 = vmatprep.mubr.msk.f32.mxu1 %vm796_vm11, %v3839_v12  ;;  %v2461_v12 = vmul.f32 -1.442695, %v2153_v41 }
0x10c7   :  { %v2155_v44 = vadd.f32 %v2460_v34, %v2145_v9 }
0x10c8   :  { %3400 = vpow2.f32 %v2461_v12 }
0x10c9   :  { %3094 = vmatmul.mubr.msk.f32.gmra.mrb[36].mxu1 %vm796_vm11, %v3850_v14  ;;  %v2464_v14 = vmul.f32 -1.442695, %v2156_v43  ;;  %v2463_v45 = vmul.f32 -1.442695, %v2155_v44 }
0x10cb   :  { %3402 = vpow2.f32 %v2464_v14 }
0x10cc   :  { %3404 = vpow2.f32 %v2463_v45 }
0x10cd   :  { %3406 = vrcp.f32 %v2170_v2 }
0x10d2   :  { %v3401_v47 = vpop.eup %3400 }
0x10d3   :  { %v2169_v49 = vadd.f32 1.0, %v3401_v47 }
0x10d5   :  { %v3403_v48 = vpop.eup %3402  ;;  %3408 = vrcp.f32 %v2169_v49 }
0x10d6   :  { %v3405_v50 = vpop.eup %3404  ;;  %v2172_v51 = vadd.f32 1.0, %v3403_v48 }
0x10d7   :  { %v2171_v52 = vadd.f32 1.0, %v3405_v50  ;;  %v3407_v54 = vpop.eup %3406 }
0x10d8   :  { %3410 = vrcp.f32 %v2172_v51  ;;  %v2182_v56 = vmul.f32 %v3407_v54, %v2154_v37 }
0x10d9   :  { %3412 = vrcp.f32 %v2171_v52 }
0x10df   :  { %v3409_v55 = vpop.eup %3408 }
0x10e0   :  { %v2181_v58 = vmul.f32 %v3409_v55, %v2153_v41 }
0x10e2   :  { %v3411_v36 = vpop.eup %3410 }
0x10e3   :  { %v3413_v53 = vpop.eup %3412  ;;  %v2184_v13 = vmul.f32 %v3411_v36, %v2156_v43 }
0x10e4   :  { %v2183_v60 = vmul.f32 %v3413_v53, %v2155_v44 }
0x1198   :  { %v3092_v57 = vpop.f32.mrb[34].mxu1 }
0x1199   :  { %v2369_v59 = vmul.f32 %v3092_v57, %v2182_v56  ;;  %v2349_v5 = vpop.f32.mrb[35].mxu1 }
0x119a   :  { %v2368_v7 = vmul.f32 %v2349_v5, %v2181_v58 }
0x119b   :  { %v2373_v10 = vadd.f32 %v2369_v59, %v3662_v29 }
0x119c   :  { %v2372_v16 = vadd.f32 %v2368_v7, %v3664_v31  ;;  %v3095_v19 = vpop.f32.mrb[36].mxu1 }
0x119d   :  { %2377 = vst [vmem:[#allocation7 + $0x8] sm:$0xff] %v2373_v10  ;;  %v2371_v22 = vmul.f32 %v3095_v19, %v2184_v13  ;;  %v2359_v25 = vpop.f32.mrb[37].mxu1 }
0x119e   :  { %2376 = vst [vmem:[#allocation7] sm:$0xff] %v2372_v16  ;;  %v2370_v63 = vmul.f32 %v2359_v25, %v2183_v60 }
0x119f   :  { %v2375_v61 = vadd.f32 %v2371_v22, %v3673_v38 }
0x11a0   :  { %v2374_v62 = vadd.f32 %v2370_v63, %v3675_v40 }
0x11a1   :  { %2379 = vst [vmem:[#allocation7 + $0x18] sm:$0xff] %v2375_v61 }
0x11a2   :  { %2378 = vst [vmem:[#allocation7 + $0x10] sm:$0xff] %v2374_v62 }
0x11a3   :  { %3469 = shalt.err (!%p3466_p6)
}
0x11a4   :  { %s3470_s15 = scalar_lea.hbm %s4110_s18, 512 }
0x11a5   :  { %p3471_p7 = scmp.ne.s32.totalorder %s4110_s18, %s3470_s15  ;;  %p3474_p8 = scmp.lt.u32.totalorder %s3470_s15, %s4110_s18 }
0x11a7   :  { %p3476_p9 = pnand %p3474_p8, %p3471_p7 }
0x11a9   :  { %3479 = shalt.err (!%p3476_p9)
}
0x11aa   :  { %2391 = dma.vmem_to_hbm [thread:$0]  %s2386_s30, 512, %s4110_s18, [#allocation4], %s3487_s2, %s3487_s2, %s3488_s23  }
0x11ab   :  { %3484 = dma.done.wait [#allocation4], 512  }
0x11ac   :  { %3485 = vsyncadd [#allocation4], 4294966784 }
0x11ad   :  { %2395 = vsyncpa [#allocation3], 1 }
0x11ae   :  { %2396 = vsyncpa [#allocation6], 1 }
0x11af   :  { %2397 = vsyncpa [#allocation4], 1 }

</bundles_post_ra>
